<compile_context>
chip_gen: v6e
topology: v6e:2x2x1
jax: 0.10.0
libtpu: 0.0.40
codegen_flags: <defaults>
</compile_context>

<pallas_src>
import functools

import jax
import jax.numpy as jnp
from jax.experimental import pallas as pl
from jax.experimental.pallas import tpu as pltpu


def _round_up(x, m):
    return (x + m - 1) // m * m


def _vmem_cap_bytes():
    """Physical VMEM per TensorCore; falls back to the v7x floor (64 MiB)."""
    try:
        return int(pltpu.get_tpu_info().vmem_capacity_bytes)
    except Exception:
        return 64 * 1024 * 1024


def _gpt_head_kernel(x_ref, w_ref, b_ref, o_ref, xn_ref):
    """One grid step computes a (tile_m, tile_v) tile of the logits.

    x_ref  : (tile_m, D)      f32   pre-summed token+position embeddings
    w_ref  : (D, tile_v)      bf16  pre-transposed head weights with ln_scale folded in
    b_ref  : (1, tile_v)      f32   precomputed bias row  (ln_shift @ W_out.T)
    o_ref  : (tile_m, tile_v)       logits tile (f32 or bf16)
    xn_ref : (tile_m, D)      bf16  VMEM scratch: normalized activations (MXU-ready)
    """
    # LayerNorm once per M-tile (vocab axis is the inner, sequential axis).
    # One-pass stats: var = E[x^2] - mean^2 (halves the XLU cross-lane reductions).
    @pl.when(pl.program_id(1) == 0)
    def _():
        x = x_ref[...]                                       # f32 (v5e has no bf16 VPU)
        inv_d = 1.0 / x.shape[-1]
        s1 = jnp.sum(x, axis=-1, keepdims=True)
        s2 = jnp.sum(x * x, axis=-1, keepdims=True)
        mean = s1 * inv_d
        var = s2 * inv_d - mean * mean                       # unbiased=False
        xn_ref[...] = ((x - mean) * jax.lax.rsqrt(var + 1e-5)).astype(xn_ref.dtype)

    # Output head: logits tile = LN(x) @ (scale * W.T)[:, tile] + (shift @ W.T)[tile]
    acc = jnp.dot(xn_ref[...], w_ref[...], preferred_element_type=jnp.float32)
    o_ref[...] = (acc + b_ref[...]).astype(o_ref.dtype)


def prepare_head(w_out, ln_scale, ln_shift, *, tile_v=1024):
    """One-time weight prep (hoisted out of the per-call path).

    Folds the LayerNorm affine into the output head:
        logits = (scale*nx + shift) @ W.T = nx @ (scale[:,None]*W.T) + shift @ W.T

    w_out: (V, D) f32 (PyTorch nn.Linear weight layout).
    Returns:
      w_t  : (D, V_pad) bf16, zero-padded so V_pad % tile_v == 0
      bias : (1, V_pad) f32
    """
    V, D = w_out.shape
    V_pad = _round_up(V, tile_v)
    w_folded = (ln_scale[:, None].astype(jnp.float32)
                * w_out.T.astype(jnp.float32)).astype(jnp.bfloat16)      # (D, V)
    bias = (ln_shift.astype(jnp.float32) @ w_out.T.astype(jnp.float32))  # (V,)
    w_t = jnp.zeros((D, V_pad), jnp.bfloat16).at[:, :V].set(w_folded)
    b = jnp.zeros((1, V_pad), jnp.float32).at[:, :V].set(bias[None, :])
    return w_t, b


@functools.partial(jax.jit,
                   static_argnames=("vocab_size", "tile_m", "tile_v", "logits_dtype"))
def dummy_gpt_forward(in_idx, tok_table, pos_table, w_t, bias, *, vocab_size,
                      tile_m=512, tile_v=1024, logits_dtype=jnp.float32):
    """in_idx: (B, T) int32 token ids -> logits (B, T, vocab_size).

    w_t / bias must come from prepare_head().  logits_dtype=jnp.bfloat16 halves
    the output writeback (f32 accumulation is kept either way).
    """
    B, T = in_idx.shape
    D = tok_table.shape[1]
    V_pad = w_t.shape[1]
    assert tile_m % 256 == 0 and tile_v % 256 == 0
    assert V_pad % tile_v == 0 and V_pad >= vocab_size
    M = B * T

    # ---- JAX glue: embedding gathers, pre-summed into one activation slab ----
    x = jnp.take(tok_table, in_idx.reshape(-1), axis=0)            # (M, D)
    x = x + jnp.tile(pos_table[:T], (B, 1))                        # + positions
    # TODO(synk): dropout + 12 DummyTransformerBlocks are identity (eval semantics).

    # Row tiling: keep tile_m a multiple of 256 (MXU-friendly on all gens); pad M.
    tile_m = min(tile_m, _round_up(M, 256))
    M_pad = _round_up(M, tile_m)
    if M_pad != M:
        x = jnp.pad(x, ((0, M_pad - M), (0, 0)))

    n_m_tiles = M_pad // tile_m
    grid = (n_m_tiles, V_pad // tile_v)
    out_bytes = jnp.dtype(logits_dtype).itemsize

    # ---- VMEM budget (double-buffered inputs/outputs + scratch), gen-aware clamp ----
    budget = (2 * tile_m * D * 4          # activation blocks (f32, 2 bufs)
              + tile_m * D * 2            # xn scratch (bf16)
              + 2 * D * tile_v * 2        # weight blocks (bf16, 2 bufs)
              + 2 * 8 * tile_v * 4        # bias blocks (sublane-padded, 2 bufs)
              + 2 * tile_m * tile_v * out_bytes)   # output blocks (2 bufs)
    vmem_limit = min(max(2 * budget, 32 * 1024 * 1024),
                     int(0.75 * _vmem_cap_bytes()))

    cost = pl.CostEstimate(
        flops=2 * M_pad * D * V_pad,
        transcendentals=M_pad,                                     # rsqrt per row
        bytes_accessed=(M_pad * D * 4                              # activations
                        + n_m_tiles * D * V_pad * 2                # weights, re-streamed per M-tile
                        + n_m_tiles * V_pad * 4                    # bias, re-streamed per M-tile
                        + M_pad * V_pad * out_bytes),              # logits writeback
    )

    logits_flat = pl.pallas_call(
        _gpt_head_kernel,
        out_shape=jax.ShapeDtypeStruct((M_pad, V_pad), logits_dtype),
        grid_spec=pltpu.PrefetchScalarGridSpec(
            num_scalar_prefetch=0,
            grid=grid,
            in_specs=[
                pl.BlockSpec((tile_m, D), lambda i, j: (i, 0)),    # activations
                pl.BlockSpec((D, tile_v), lambda i, j: (0, j)),    # head weights (bf16)
                pl.BlockSpec((1, tile_v), lambda i, j: (0, j)),    # bias row (f32)
            ],
            out_specs=pl.BlockSpec((tile_m, tile_v), lambda i, j: (i, j)),
            scratch_shapes=[pltpu.VMEM((tile_m, D), jnp.bfloat16)],
        ),
        compiler_params=pltpu.CompilerParams(
            dimension_semantics=("parallel", "arbitrary"),
            vmem_limit_bytes=vmem_limit,
        ),
        cost_estimate=cost,
    )(x, w_t, bias)

    return logits_flat[:M, :vocab_size].reshape(B, T, vocab_size)


def init_params(key, *, vocab_size, context_length, emb_dim):
    k1, k2, k3, k4, k5 = jax.random.split(key, 5)
    return {
        "tok_emb": jax.random.normal(k1, (vocab_size, emb_dim), jnp.float32),
        "pos_emb": jax.random.normal(k2, (context_length, emb_dim), jnp.float32),
        # Module inits these to ones/zeros; perturb slightly so the affine path
        # is actually exercised by the correctness check (same code path).
        "ln_scale": 1.0 + 0.1 * jax.random.normal(k4, (emb_dim,), jnp.float32),
        "ln_shift": 0.05 * jax.random.normal(k5, (emb_dim,), jnp.float32),
        # nn.Linear(emb_dim, vocab_size, bias=False).weight has shape (V, D)
        "out_head": jax.random.normal(k3, (vocab_size, emb_dim), jnp.float32) * 0.02,
    }


def _reference_forward(in_idx, params):
    """Pure-JAX f32 reference mirroring the PyTorch module (eval-mode dropout)."""
    B, T = in_idx.shape
    x = jnp.take(params["tok_emb"], in_idx.reshape(-1), axis=0).reshape(B, T, -1)
    x = x + params["pos_emb"][:T][None, :, :]
    mean = jnp.mean(x, axis=-1, keepdims=True)
    var = jnp.mean((x - mean) ** 2, axis=-1, keepdims=True)
    x = (x - mean) / jnp.sqrt(var + 1e-5)
    x = params["ln_scale"] * x + params["ln_shift"]
    return x @ params["out_head"].T


if __name__ == "__main__":
    # Small, shape-consistent config (scaled-down GPT_CONFIG_124M).
    # vocab_size deliberately NOT a multiple of the vocab tile to exercise padding.
    cfg = {
        "vocab_size": 1000,
        "context_length": 64,
        "emb_dim": 128,
        "drop_rate": 0.1,
    }
    B, T = 2, 8
    TILE_V = 1024

    key = jax.random.PRNGKey(0)
    kp, kx = jax.random.split(key)
    params = init_params(kp,
                         vocab_size=cfg["vocab_size"],
                         context_length=cfg["context_length"],
                         emb_dim=cfg["emb_dim"])
    in_idx = jax.random.randint(kx, (B, T), 0, cfg["vocab_size"], dtype=jnp.int32)

    # One-time weight prep (transpose + ln-affine fold + bf16 cast + vocab padding).
    w_t, bias = prepare_head(params["out_head"], params["ln_scale"],
                             params["ln_shift"], tile_v=TILE_V)

    logits = dummy_gpt_forward(in_idx,
                               params["tok_emb"], params["pos_emb"],
                               w_t, bias,
                               vocab_size=cfg["vocab_size"],
                               tile_m=512, tile_v=TILE_V,
                               logits_dtype=jnp.float32)
    logits = jax.block_until_ready(logits)

    ref = _reference_forward(in_idx, params)
    assert logits.shape == (B, T, cfg["vocab_size"]), logits.shape
    # bf16 weights/activations in the matmul (f32 accumulation) -> relaxed tolerance.
    assert jnp.allclose(logits, ref, atol=1e-2, rtol=1e-2), (
        "mismatch vs reference: max abs diff = "
        f"{float(jnp.max(jnp.abs(logits - ref)))}")

    print("KERNEL_OK")
</pallas_src>

<mosaic_0001>
module attributes {stable_mosaic.version = 11 : i64} {
  func.func @_gpt_head_kernel(%arg0: i32, %arg1: i32, %arg2: memref<256x128xf32, #tpu.memory_space<vmem>>, %arg3: memref<128x1024xbf16, #tpu.memory_space<vmem>>, %arg4: memref<1x1024xf32, #tpu.memory_space<vmem>>, %arg5: memref<256x1024xf32, #tpu.memory_space<vmem>>, %arg6: memref<256x128xbf16, #tpu.memory_space<vmem>>) attributes {dimension_semantics = [#tpu.dimension_semantics<parallel>, #tpu.dimension_semantics<arbitrary>], iteration_bounds = array<i64: 1, 1>, scalar_prefetch = 0 : i64, scratch_operands = 1 : i64, tpu.core_type = #tpu.core_type<tc>, window_params = [{transform_indices = @transform_0, window_bounds = array<i64: 256, 128>}, {transform_indices = @transform_1, window_bounds = array<i64: 128, 1024>}, {transform_indices = @transform_2, window_bounds = array<i64: 1, 1024>}, {transform_indices = @transform_3, window_bounds = array<i64: 256, 1024>}]} {
    %c0_i32 = arith.constant 0 : i32
    %0 = arith.cmpi eq, %arg1, %c0_i32 : i32
    %1 = arith.extui %0 : i1 to i32
    %c0_i32_0 = arith.constant 0 : i32
    %2 = arith.cmpi ne, %1, %c0_i32_0 : i32
    scf.if %2 {
      %c0_8 = arith.constant 0 : index
      %c0_9 = arith.constant 0 : index
      %10 = vector.load %arg2[%c0_8, %c0_9] : memref<256x128xf32, #tpu.memory_space<vmem>>, vector<256x128xf32>
      %cst_10 = arith.constant dense<0.000000e+00> : vector<256xf32>
      %11 = vector.multi_reduction <add>, %10, %cst_10 [1] : vector<256x128xf32> to vector<256xf32>
      %12 = vector.shape_cast %11 : vector<256xf32> to vector<256x1xf32>
      %13 = arith.mulf %10, %10 : vector<256x128xf32>
      %cst_11 = arith.constant dense<0.000000e+00> : vector<256xf32>
      %14 = vector.multi_reduction <add>, %13, %cst_11 [1] : vector<256x128xf32> to vector<256xf32>
      %15 = vector.shape_cast %14 : vector<256xf32> to vector<256x1xf32>
      %cst_12 = arith.constant 7.812500e-03 : f32
      %16 = vector.broadcast %cst_12 : f32 to vector<256x1xf32>
      %17 = arith.mulf %12, %16 : vector<256x1xf32>
      %cst_13 = arith.constant 7.812500e-03 : f32
      %18 = vector.broadcast %cst_13 : f32 to vector<256x1xf32>
      %19 = arith.mulf %15, %18 : vector<256x1xf32>
      %20 = arith.mulf %17, %17 : vector<256x1xf32>
      %21 = arith.subf %19, %20 : vector<256x1xf32>
      %22 = vector.broadcast %17 : vector<256x1xf32> to vector<256x128xf32>
      %23 = arith.subf %10, %22 : vector<256x128xf32>
      %cst_14 = arith.constant 9.99999974E-6 : f32
      %24 = vector.broadcast %cst_14 : f32 to vector<256x1xf32>
      %25 = arith.addf %21, %24 : vector<256x1xf32>
      %26 = math.rsqrt %25 : vector<256x1xf32>
      %27 = vector.broadcast %26 : vector<256x1xf32> to vector<256x128xf32>
      %28 = arith.mulf %23, %27 : vector<256x128xf32>
      %29 = arith.truncf %28 : vector<256x128xf32> to vector<256x128xbf16>
      %c0_15 = arith.constant 0 : index
      %c0_16 = arith.constant 0 : index
      %30 = vector.load %arg6[%c0_15, %c0_16] : memref<256x128xbf16, #tpu.memory_space<vmem>>, vector<256x128xbf16>
      tpu.vector_store %arg6[%c0_15, %c0_16], %29 {strides = array<i32>} : memref<256x128xbf16, #tpu.memory_space<vmem>>, vector<256x128xbf16>,
    } else {
    }
    %c0 = arith.constant 0 : index
    %c0_1 = arith.constant 0 : index
    %3 = vector.load %arg6[%c0, %c0_1] : memref<256x128xbf16, #tpu.memory_space<vmem>>, vector<256x128xbf16>
    %c0_2 = arith.constant 0 : index
    %c0_3 = arith.constant 0 : index
    %4 = vector.load %arg3[%c0_2, %c0_3] : memref<128x1024xbf16, #tpu.memory_space<vmem>>, vector<128x1024xbf16>
    %cst = arith.constant dense<0.000000e+00> : vector<256x1024xf32>
    %5 = tpu.matmul %3, %4, %cst {dimension_numbers = #tpu.dot_dimension_numbers<[1], [0], [0], [1], [0, 0, 1, 1], [], []>} : vector<256x128xbf16>, vector<128x1024xbf16>, vector<256x1024xf32> -> vector<256x1024xf32>
    %c0_4 = arith.constant 0 : index
    %c0_5 = arith.constant 0 : index
    %6 = vector.load %arg4[%c0_4, %c0_5] : memref<1x1024xf32, #tpu.memory_space<vmem>>, vector<1x1024xf32>
    %7 = vector.broadcast %6 : vector<1x1024xf32> to vector<256x1024xf32>
    %8 = arith.addf %5, %7 : vector<256x1024xf32>
    %c0_6 = arith.constant 0 : index
    %c0_7 = arith.constant 0 : index
    %9 = vector.load %arg5[%c0_6, %c0_7] : memref<256x1024xf32, #tpu.memory_space<vmem>>, vector<256x1024xf32>
    tpu.vector_store %arg5[%c0_6, %c0_7], %8 {strides = array<i32>} : memref<256x1024xf32, #tpu.memory_space<vmem>>, vector<256x1024xf32>,
    return
  }
  func.func @transform_0(%arg0: i32, %arg1: i32) -> (i32, i32) {
    %c0_i32 = arith.constant 0 : i32
    %c0_i32_0 = arith.constant 0 : i32
    return %arg0, %c0_i32 : i32, i32
  }
  func.func @transform_1(%arg0: i32, %arg1: i32) -> (i32, i32) {
    %c0_i32 = arith.constant 0 : i32
    %c0_i32_0 = arith.constant 0 : i32
    return %c0_i32, %arg1 : i32, i32
  }
  func.func @transform_2(%arg0: i32, %arg1: i32) -> (i32, i32) {
    %c0_i32 = arith.constant 0 : i32
    %c0_i32_0 = arith.constant 0 : i32
    return %c0_i32, %arg1 : i32, i32
  }
  func.func @transform_3(%arg0: i32, %arg1: i32) -> (i32, i32) {
    %c0_i32 = arith.constant 0 : i32
    return %arg0, %arg1 : i32, i32
  }
}

</mosaic_0001>

<bundles_post_ra>
// kernel: dummy_gpt_forward.1
= control target key start
LH: loop header
LB: loop body
LE: loop exit
PB: predicated region body
PF: predicated region fallthrough
CT: control target
= control target key end

     0   :  { %8 = vsyncpa [#allocation4], 0  ;;  %s2581_s12 = smov [#allocation3]   ;;  %s4316_s0 = inlined_call_operand.vmem [shape: f32[256,128], index: 0, kind: input, shape index: {}]   ;;  %s4317_s1 = inlined_call_operand.hbm [shape: bf16[128,1024], index: 1, kind: input, shape index: {}]   ;;  %s4318_s2 = inlined_call_operand.vmem [shape: f32[1,1024], index: 2, kind: input, shape index: {}]   ;;  %s4319_s3 = inlined_call_operand.vmem [shape: f32[256,1024], index: 3, kind: output, shape index: {}]  }
   0x1   :  { %s16_s13 = sshll.u32 %s2581_s12, 4  ;;  %s17_s13 = int_to_ptr.vmem [resolvable:$true] %s16_s13 }
   0x2   :  { %s2567_s14 = scalar_lea.vmem %s17_s13, 8192  ;;  %p2572_p1 = scmp.lt.s32.totalorder %s17_s13, %s17_s13 }
   0x3   :  { %p2568_p0 = scmp.ne.s32.totalorder %s17_s13, %s2567_s14  ;;  %p2573_p2 = scmp.lt.s32.totalorder %s2567_s14, %s2567_s14 }
   0x5   :  { %p2574_p3 = por %p2573_p2, %p2572_p1 }
   0x7   :  { %p2575_p4 = pnand %p2574_p3, %p2568_p0 }
   0x9   :  { %2578 = shalt.err (!%p2575_p4)
}
   0xa   :  { %s2582_s15 = smov 512   ;;  %s2583_s16 = smov 32  }
   0xb   :  { %22 = dma.hbm_to_vmem [thread:$0]  %s4317_s1, 8192, %s17_s13, [#allocation4], %s2582_s15, %s2582_s15, %s2583_s16  }
   0xc   :  { %2579 = dma.done.wait [#allocation4], 8192  }
   0xd   :  { %2580 = vsyncadd [#allocation4], 4294959104  ;;  %v2611_v0 = vld [vmem:[%s4316_s0] sm:$0xff]  ;;  %v2616_v1 = vld [vmem:[%s4316_s0 + $0x8] sm:$0xff] }
   0xe   :  { %65 = vadd.xlane.f32.xlu0 %v2611_v0  ;;  %v129_v2 = vmul.f32 %v2611_v0, %v2611_v0  ;;  %v130_v3 = vmul.f32 %v2616_v1, %v2616_v1  ;;  %v2627_v4 = vld [vmem:[%s4316_s0 + $0x10] sm:$0xff]  ;;  %v2632_v5 = vld [vmem:[%s4316_s0 + $0x18] sm:$0xff]  ;;  %v2643_v8 = vld [vmem:[%s4316_s0 + $0x20] sm:$0xff] }
   0xf   :  { %v131_v6 = vmul.f32 %v2627_v4, %v2627_v4  ;;  %v132_v7 = vmul.f32 %v2632_v5, %v2632_v5  ;;  %v729_v9 = vld [vmem:[#allocation3 + $0x1c0] sm:$0xff]  ;;  %v730_v11 = vld [vmem:[#allocation3 + $0x1c8] sm:$0xff]  ;;  %v133_v15 = vmul.f32 %v2643_v8, %v2643_v8  ;;  %v2659_v28 = vld [vmem:[%s4316_s0 + $0x30] sm:$0xff] }
  0x10   :  { %161 = vadd.xlane.f32.xlu1 %v129_v2  ;;  %v733_v10 = vld [vmem:[#allocation3 + $0x1e0] sm:$0xff]  ;;  %v2648_v12 = vld [vmem:[%s4316_s0 + $0x28] sm:$0xff]  ;;  %v2664_v32 = vld [vmem:[%s4316_s0 + $0x38] sm:$0xff]  ;;  %v135_v35 = vmul.f32 %v2659_v28, %v2659_v28 }
  0x11   :  { %v2333_v13 = vcombine.high %v729_v9, %v733_v10  ;;  %v734_v14 = vld [vmem:[#allocation3 + $0x1e8] sm:$0xff]  ;;  %v2332_v17 = vcombine.low %v729_v9, %v733_v10  ;;  %v134_v19 = vmul.f32 %v2648_v12, %v2648_v12  ;;  %v721_v20 = vld [vmem:[#allocation3 + $0x180] sm:$0xff]  ;;  %v136_v39 = vmul.f32 %v2664_v32, %v2664_v32  ;;  %v2696_v10 = vld [vmem:[%s4316_s0 + $0x58] sm:$0xff] }
  0x12   :  { %67 = vadd.xlane.f32.xlu0 %v2616_v1  ;;  %v2335_v16 = vcombine.high %v730_v11, %v734_v14  ;;  %v2334_v18 = vcombine.low %v730_v11, %v734_v14  ;;  %v725_v21 = vld [vmem:[#allocation3 + $0x1a0] sm:$0xff]  ;;  %v722_v22 = vld [vmem:[#allocation3 + $0x188] sm:$0xff] }
  0x13   :  { %1195 = vmatprep.subr.bf16.mxu0 %v2333_v13  ;;  %v2325_v23 = vcombine.high %v721_v20, %v725_v21  ;;  %v726_v24 = vld [vmem:[#allocation3 + $0x1a8] sm:$0xff]  ;;  %v2324_v26 = vcombine.low %v721_v20, %v725_v21  ;;  %v713_v29 = vld [vmem:[#allocation3 + $0x140] sm:$0xff]  ;;  %v140_v21 = vmul.f32 %v2696_v10, %v2696_v10 }
  0x14   :  { %163 = vadd.xlane.f32.xlu1 %v130_v3  ;;  %1388 = vmatprep.subr.bf16.mxu1 %v2335_v16  ;;  %v2327_v25 = vcombine.high %v722_v22, %v726_v24  ;;  %v2326_v27 = vcombine.low %v722_v22, %v726_v24  ;;  %v717_v30 = vld [vmem:[#allocation3 + $0x160] sm:$0xff]  ;;  %v714_v31 = vld [vmem:[#allocation3 + $0x148] sm:$0xff]  ;;  %v2691_v3 = vld [vmem:[%s4316_s0 + $0x50] sm:$0xff] }
  0x15   :  { %1196 = vmatpush1.bf16.msra.mxu0 %v2332_v17  ;;  %1389 = vmatpush1.bf16.msra.mxu1 %v2334_v18  ;;  %v2317_v33 = vcombine.high %v713_v29, %v717_v30  ;;  %v718_v34 = vld [vmem:[#allocation3 + $0x168] sm:$0xff]  ;;  %v2316_v37 = vcombine.low %v713_v29, %v717_v30  ;;  %v705_v40 = vld [vmem:[#allocation3 + $0x100] sm:$0xff] }
  0x16   :  { %69 = vadd.xlane.f32.xlu0 %v2627_v4  ;;  %1197 = vmatprep.subr.bf16.mxu0 %v2325_v23  ;;  %v2319_v36 = vcombine.high %v714_v31, %v718_v34  ;;  %v2318_v38 = vcombine.low %v714_v31, %v718_v34  ;;  %v709_v41 = vld [vmem:[#allocation3 + $0x120] sm:$0xff]  ;;  %v706_v42 = vld [vmem:[#allocation3 + $0x108] sm:$0xff] }
  0x17   :  { %1390 = vmatprep.subr.bf16.mxu1 %v2327_v25  ;;  %v2309_v43 = vcombine.high %v705_v40, %v709_v41  ;;  %v710_v44 = vld [vmem:[#allocation3 + $0x128] sm:$0xff]  ;;  %v2675_v45 = vld [vmem:[%s4316_s0 + $0x40] sm:$0xff]  ;;  %v2308_v47 = vcombine.low %v705_v40, %v709_v41 }
  0x18   :  { %71 = vadd.xlane.f32.xlu1 %v2632_v5  ;;  %v2311_v46 = vcombine.high %v706_v42, %v710_v44  ;;  %v2310_v48 = vcombine.low %v706_v42, %v710_v44  ;;  %v2680_v49 = vld [vmem:[%s4316_s0 + $0x48] sm:$0xff]  ;;  %v697_v50 = vld [vmem:[#allocation3 + $0xc0] sm:$0xff]  ;;  %v137_v53 = vmul.f32 %v2675_v45, %v2675_v45 }
  0x19   :  { %1198 = vmatpush1.bf16.msra.mxu0 %v2324_v26  ;;  %1391 = vmatpush1.bf16.msra.mxu1 %v2326_v27  ;;  %v701_v51 = vld [vmem:[#allocation3 + $0xe0] sm:$0xff]  ;;  %v698_v52 = vld [vmem:[#allocation3 + $0xc8] sm:$0xff]  ;;  %v138_v59 = vmul.f32 %v2680_v49, %v2680_v49 }
  0x1a   :  { %165 = vadd.xlane.f32.xlu0 %v131_v6  ;;  %1199 = vmatprep.subr.bf16.mxu0 %v2317_v33  ;;  %v2301_v54 = vcombine.high %v697_v50, %v701_v51  ;;  %v702_v55 = vld [vmem:[#allocation3 + $0xe8] sm:$0xff]  ;;  %v2300_v57 = vcombine.low %v697_v50, %v701_v51  ;;  %v689_v60 = vld [vmem:[#allocation3 + $0x80] sm:$0xff]  ;;  %v2767_v50 = vld [vmem:[#allocation3 + $0x1d0] sm:$0xff] }
  0x1b   :  { %1392 = vmatprep.subr.bf16.mxu1 %v2319_v36  ;;  %v2303_v56 = vcombine.high %v698_v52, %v702_v55  ;;  %v2302_v58 = vcombine.low %v698_v52, %v702_v55  ;;  %v693_v61 = vld [vmem:[#allocation3 + $0xa0] sm:$0xff]  ;;  %v690_v62 = vld [vmem:[#allocation3 + $0x88] sm:$0xff]  ;;  %v2769_v51 = vld [vmem:[#allocation3 + $0x1f0] sm:$0xff] }
  0x1c   :  { %167 = vadd.xlane.f32.xlu1 %v132_v7  ;;  %v2293_v63 = vcombine.high %v689_v60, %v693_v61  ;;  %v694_v2 = vld [vmem:[#allocation3 + $0xa8] sm:$0xff]  ;;  %v2292_v7 = vcombine.low %v689_v60, %v693_v61  ;;  %v681_v11 = vld [vmem:[#allocation3 + $0x40] sm:$0xff]  ;;  %v2771_v52 = vld [vmem:[#allocation3 + $0x1d8] sm:$0xff] }
  0x1d   :  { %1200 = vmatpush1.bf16.msra.mxu0 %v2316_v37  ;;  %1393 = vmatpush1.bf16.msra.mxu1 %v2318_v38  ;;  %v2295_v6 = vcombine.high %v690_v62, %v694_v2  ;;  %v2294_v9 = vcombine.low %v690_v62, %v694_v2  ;;  %v685_v13 = vld [vmem:[#allocation3 + $0x60] sm:$0xff]  ;;  %v682_v14 = vld [vmem:[#allocation3 + $0x48] sm:$0xff]  ;;  %v2725_v37 = vld [vmem:[%s4316_s0 + $0x70] sm:$0xff] }
  0x1e   :  { %73 = vadd.xlane.f32.xlu0 %v2643_v8  ;;  %1201 = vmatprep.subr.bf16.mxu0 %v2309_v43  ;;  %v2285_v16 = vcombine.high %v681_v11, %v685_v13  ;;  %v686_v17 = vld [vmem:[#allocation3 + $0x68] sm:$0xff]  ;;  %v673_v22 = vld [vmem:[#allocation3] sm:$0xff]  ;;  %v2730_v38 = vld [vmem:[%s4316_s0 + $0x78] sm:$0xff] }
  0x1f   :  { %1394 = vmatprep.subr.bf16.mxu1 %v2311_v46  ;;  %v2287_v18 = vcombine.high %v682_v14, %v686_v17  ;;  %v2286_v20 = vcombine.low %v682_v14, %v686_v17  ;;  %v677_v23 = vld [vmem:[#allocation3 + $0x20] sm:$0xff]  ;;  %v674_v24 = vld [vmem:[#allocation3 + $0x8] sm:$0xff]  ;;  %v144_v40 = vmul.f32 %v2730_v38, %v2730_v38  ;;  %v2757_v46 = vld [vmem:[%s4316_s0 + $0x90] sm:$0xff] }
  0x20   :  { %75 = vadd.xlane.f32.xlu1 %v2648_v12  ;;  %v2277_v25 = vcombine.high %v673_v22, %v677_v23  ;;  %v678_v26 = vld [vmem:[#allocation3 + $0x28] sm:$0xff]  ;;  %v2707_v27 = vld [vmem:[%s4316_s0 + $0x60] sm:$0xff]  ;;  %v2276_v30 = vcombine.low %v673_v22, %v677_v23  ;;  %v2777_v55 = vld [vmem:[#allocation3 + $0x1f8] sm:$0xff] }
  0x21   :  { %1202 = vmatpush1.bf16.msra.mxu0 %v2308_v47  ;;  %1395 = vmatpush1.bf16.msra.mxu1 %v2310_v48  ;;  %v2279_v29 = vcombine.high %v674_v24, %v678_v26  ;;  %v2278_v31 = vcombine.low %v674_v24, %v678_v26  ;;  %v2712_v33 = vld [vmem:[%s4316_s0 + $0x68] sm:$0xff]  ;;  %v141_v34 = vmul.f32 %v2707_v27, %v2707_v27  ;;  %v2741_v41 = vld [vmem:[%s4316_s0 + $0x80] sm:$0xff]  ;;  %v2762_v47 = vld [vmem:[%s4316_s0 + $0x98] sm:$0xff] }
  0x22   :  { %169 = vadd.xlane.f32.xlu0 %v133_v15  ;;  %1203 = vmatprep.subr.bf16.mxu0 %v2301_v54  ;;  %v139_v15 = vmul.f32 %v2691_v3, %v2691_v3  ;;  %v142_v36 = vmul.f32 %v2712_v33, %v2712_v33  ;;  %v2746_v42 = vld [vmem:[%s4316_s0 + $0x88] sm:$0xff]  ;;  %v145_v43 = vmul.f32 %v2741_v41, %v2741_v41  ;;  %v2810_v2 = vld [vmem:[%s4316_s0 + $0xb8] sm:$0xff]  ;;  %v63_v23 = vld [vmem:[%s4316_s0 + $0xf0] sm:$0xff] }
  0x23   :  { %1396 = vmatprep.subr.bf16.mxu1 %v2303_v56  ;;  %v146_v44 = vmul.f32 %v2746_v42, %v2746_v42  ;;  %v147_v48 = vmul.f32 %v2757_v46, %v2757_v46  ;;  %v2337_v54 = vcombine.high %v2767_v50, %v2769_v51  ;;  %v148_v56 = vmul.f32 %v2762_v47, %v2762_v47  ;;  %v2794_v60 = vld [vmem:[%s4316_s0 + $0xa8] sm:$0xff]  ;;  %v64_v24 = vld [vmem:[%s4316_s0 + $0xf8] sm:$0xff] }
  0x24   :  { %171 = vadd.xlane.f32.xlu1 %v134_v19  ;;  %v2284_v19 = vcombine.low %v681_v11, %v685_v13  ;;  %v150_v62 = vmul.f32 %v2794_v60, %v2794_v60  ;;  %v58_v11 = vld [vmem:[%s4316_s0 + $0xc8] sm:$0xff]  ;;  %v160_v26 = vmul.f32 %v64_v24, %v64_v24 }
  0x25   :  { %1204 = vmatpush1.bf16.msra.mxu0 %v2300_v57  ;;  %1397 = vmatpush1.bf16.msra.mxu1 %v2302_v58  ;;  %v2338_v57 = vcombine.low %v2771_v52, %v2777_v55  ;;  %v2339_v58 = vcombine.high %v2771_v52, %v2777_v55  ;;  %v154_v14 = vmul.f32 %v58_v11, %v58_v11  ;;  %v2902_v52 = vld [vmem:[#allocation3 + $0x110] sm:$0xff] }
  0x26   :  { %77 = vadd.xlane.f32.xlu0 %v2659_v28  ;;  %1205 = vmatprep.subr.bf16.mxu0 %v2293_v63  ;;  %v2805_v63 = vld [vmem:[%s4316_s0 + $0xb0] sm:$0xff] }
  0x27   :  { %1398 = vmatprep.subr.bf16.mxu1 %v2295_v6  ;;  %v151_v6 = vmul.f32 %v2805_v63, %v2805_v63 }
  0x28   :  { %79 = vadd.xlane.f32.xlu1 %v2664_v32 }
  0x29   :  { %1206 = vmatpush1.bf16.msra.mxu0 %v2292_v7  ;;  %1399 = vmatpush1.bf16.msra.mxu1 %v2294_v9  ;;  %v152_v7 = vmul.f32 %v2810_v2, %v2810_v2  ;;  %v57_v9 = vld [vmem:[%s4316_s0 + $0xc0] sm:$0xff] }
  0x2a   :  { %173 = vadd.xlane.f32.xlu0 %v135_v35  ;;  %1207 = vmatprep.subr.bf16.mxu0 %v2285_v16  ;;  %v2584_v35 = vmov 0   ;;  %v153_v13 = vmul.f32 %v57_v9, %v57_v9  ;;  %v60_v16 = vld [vmem:[%s4316_s0 + $0xd8] sm:$0xff] }
  0x2b   :  { %1400 = vmatprep.subr.bf16.mxu1 %v2287_v18  ;;  %1227 = vmatprep.mubr.bf16.mxu0 %v2584_v35  ;;  %v156_v18 = vmul.f32 %v60_v16, %v60_v16 }
  0x2c   :  { %175 = vadd.xlane.f32.xlu1 %v136_v39  ;;  %1420 = vmatprep.mubr.bf16.mxu1 %v2584_v35  ;;  %v143_v39 = vmul.f32 %v2725_v37, %v2725_v37 }
  0x2d   :  { %1208 = vmatpush1.bf16.msra.mxu0 %v2284_v19  ;;  %1401 = vmatpush1.bf16.msra.mxu1 %v2286_v20  ;;  %v61_v19 = vld [vmem:[%s4316_s0 + $0xe0] sm:$0xff]  ;;  %v62_v20 = vld [vmem:[%s4316_s0 + $0xe8] sm:$0xff] }
  0x2e   :  { %81 = vadd.xlane.f32.xlu0 %v2675_v45  ;;  %1209 = vmatprep.subr.bf16.mxu0 %v2277_v25  ;;  %v158_v22 = vmul.f32 %v62_v20, %v62_v20  ;;  %v159_v25 = vmul.f32 %v63_v23, %v63_v23 }
  0x2f   :  { %1402 = vmatprep.subr.bf16.mxu1 %v2279_v29 }
  0x30   :  { %83 = vadd.xlane.f32.xlu1 %v2680_v49 }
  0x31   :  { %1210 = vmatpush1.bf16.msra.mxu0 %v2276_v30  ;;  %1403 = vmatpush1.bf16.msra.mxu1 %v2278_v31 }
  0x32   :  { %177 = vadd.xlane.f32.xlu0 %v137_v53  ;;  %v2336_v53 = vcombine.low %v2767_v50, %v2769_v51  ;;  %1581 = vmatprep.subr.bf16.mxu0 %v2337_v54 }
  0x33   :  { %1774 = vmatprep.subr.bf16.mxu1 %v2339_v58 }
  0x34   :  { %179 = vadd.xlane.f32.xlu1 %v138_v59  ;;  %v2789_v59 = vld [vmem:[%s4316_s0 + $0xa0] sm:$0xff] }
  0x35   :  { %v149_v61 = vmul.f32 %v2789_v59, %v2789_v59 }
  0x36   :  { %85 = vadd.xlane.f32.xlu0 %v2691_v3 }
  0x38   :  { %87 = vadd.xlane.f32.xlu1 %v2696_v10 }
  0x3a   :  { %181 = vadd.xlane.f32.xlu0 %v139_v15  ;;  %v59_v15 = vld [vmem:[%s4316_s0 + $0xd0] sm:$0xff] }
  0x3b   :  { %v155_v17 = vmul.f32 %v59_v15, %v59_v15 }
  0x3c   :  { %183 = vadd.xlane.f32.xlu1 %v140_v21  ;;  %v157_v21 = vmul.f32 %v61_v19, %v61_v19 }
  0x3e   :  { %89 = vadd.xlane.f32.xlu0 %v2707_v27 }
  0x40   :  { %91 = vadd.xlane.f32.xlu1 %v2712_v33 }
  0x42   :  { %185 = vadd.xlane.f32.xlu0 %v141_v34 }
  0x44   :  { %187 = vadd.xlane.f32.xlu1 %v142_v36 }
  0x46   :  { %93 = vadd.xlane.f32.xlu0 %v2725_v37 }
  0x48   :  { %95 = vadd.xlane.f32.xlu1 %v2730_v38 }
  0x4a   :  { %189 = vadd.xlane.f32.xlu0 %v143_v39 }
  0x4c   :  { %191 = vadd.xlane.f32.xlu1 %v144_v40 }
  0x4e   :  { %97 = vadd.xlane.f32.xlu0 %v2741_v41 }
  0x50   :  { %99 = vadd.xlane.f32.xlu1 %v2746_v42 }
  0x52   :  { %193 = vadd.xlane.f32.xlu0 %v145_v43 }
  0x54   :  { %195 = vadd.xlane.f32.xlu1 %v146_v44 }
  0x56   :  { %101 = vadd.xlane.f32.xlu0 %v2757_v46 }
  0x58   :  { %103 = vadd.xlane.f32.xlu1 %v2762_v47 }
  0x5a   :  { %197 = vadd.xlane.f32.xlu0 %v147_v48 }
  0x5c   :  { %199 = vadd.xlane.f32.xlu1 %v148_v56 }
  0x5e   :  { %105 = vadd.xlane.f32.xlu0 %v2789_v59 }
  0x60   :  { %107 = vadd.xlane.f32.xlu1 %v2794_v60 }
  0x62   :  { %201 = vadd.xlane.f32.xlu0 %v149_v61 }
  0x64   :  { %203 = vadd.xlane.f32.xlu1 %v150_v62 }
  0x66   :  { %109 = vadd.xlane.f32.xlu0 %v2805_v63 }
  0x68   :  { %111 = vadd.xlane.f32.xlu1 %v2810_v2 }
  0x6a   :  { %205 = vadd.xlane.f32.xlu0 %v151_v6 }
  0x6c   :  { %207 = vadd.xlane.f32.xlu1 %v152_v7 }
  0x6e   :  { %113 = vadd.xlane.f32.xlu0 %v57_v9 }
  0x70   :  { %115 = vadd.xlane.f32.xlu1 %v58_v11 }
  0x72   :  { %209 = vadd.xlane.f32.xlu0 %v153_v13 }
  0x74   :  { %211 = vadd.xlane.f32.xlu1 %v154_v14 }
  0x76   :  { %117 = vadd.xlane.f32.xlu0 %v59_v15 }
  0x78   :  { %119 = vadd.xlane.f32.xlu1 %v60_v16 }
  0x7a   :  { %213 = vadd.xlane.f32.xlu0 %v155_v17 }
  0x7c   :  { %215 = vadd.xlane.f32.xlu1 %v156_v18 }
  0x7e   :  { %121 = vadd.xlane.f32.xlu0 %v61_v19 }
  0x80   :  { %123 = vadd.xlane.f32.xlu1 %v62_v20 }
  0x82   :  { %217 = vadd.xlane.f32.xlu0 %v157_v21 }
  0x84   :  { %219 = vadd.xlane.f32.xlu1 %v158_v22 }
  0x86   :  { %125 = vadd.xlane.f32.xlu0 %v63_v23 }
  0x88   :  { %127 = vadd.xlane.f32.xlu1 %v64_v24 }
  0x8a   :  { %221 = vadd.xlane.f32.xlu0 %v159_v25 }
  0x8c   :  { %223 = vadd.xlane.f32.xlu1 %v160_v26 }
  0x97   :  { %v66_v29 = vpop.xlane.xlu0 %65 }
  0x98   :  { %v225_v30 = vmul.f32 0.0078125, %v66_v29 }
  0x99   :  { %v162_v31 = vpop.xlane.xlu1 %161 }
  0x9a   :  { %v289_v34 = vmul.f32 %v225_v30, %v225_v30  ;;  %v257_v36 = vmul.f32 0.0078125, %v162_v31 }
  0x9b   :  { %v68_v39 = vpop.xlane.xlu0 %67 }
  0x9c   :  { %v321_v40 = vsub.f32 %v257_v36, %v289_v34  ;;  %v226_v43 = vmul.f32 0.0078125, %v68_v39 }
  0x9d   :  { %v164_v44 = vpop.xlane.xlu1 %163 }
  0x9e   :  { %v385_v48 = vadd.f32 1e-05, %v321_v40  ;;  %v290_v54 = vmul.f32 %v226_v43, %v226_v43  ;;  %v258_v56 = vmul.f32 0.0078125, %v164_v44 }
  0x9f   :  { %v70_v58 = vpop.xlane.xlu0 %69 }
  0xa0   :  { %v322_v61 = vsub.f32 %v258_v56, %v290_v54  ;;  %v227_v62 = vmul.f32 0.0078125, %v70_v58  ;;  %2487 = vrsqrt.f32 %v385_v48  ;;  %v353_v48 = vsub.f32 %v2611_v0, %v225_v30 }
  0xa1   :  { %v72_v6 = vpop.xlane.xlu1 %71  ;;  %v354_v56 = vsub.f32 %v2616_v1, %v226_v43 }
  0xa2   :  { %v386_v7 = vadd.f32 1e-05, %v322_v61  ;;  %v291_v9 = vmul.f32 %v227_v62, %v227_v62  ;;  %v228_v11 = vmul.f32 0.0078125, %v72_v6 }
  0xa3   :  { %v166_v13 = vpop.xlane.xlu0 %165 }
  0xa4   :  { %2489 = vrsqrt.f32 %v386_v7  ;;  %v259_v14 = vmul.f32 0.0078125, %v166_v13  ;;  %v292_v16 = vmul.f32 %v228_v11, %v228_v11 }
  0xa5   :  { %v168_v15 = vpop.xlane.xlu1 %167 }
  0xa6   :  { %v323_v17 = vsub.f32 %v259_v14, %v291_v9  ;;  %v260_v18 = vmul.f32 0.0078125, %v168_v15 }
  0xa7   :  { %v74_v19 = vpop.xlane.xlu0 %73 }
  0xa8   :  { %v387_v20 = vadd.f32 1e-05, %v323_v17  ;;  %v324_v21 = vsub.f32 %v260_v18, %v292_v16  ;;  %v2842_v22 = vmul.f32 0.0078125, %v74_v19 }
  0xa9   :  { %v76_v23 = vpop.xlane.xlu1 %75 }
  0xaa   :  { %2491 = vrsqrt.f32 %v387_v20  ;;  %v388_v24 = vadd.f32 1e-05, %v324_v21  ;;  %v293_v25 = vmul.f32 %v2842_v22, %v2842_v22  ;;  %v2846_v26 = vmul.f32 0.0078125, %v76_v23 }
  0xab   :  { %v170_v29 = vpop.xlane.xlu0 %169  ;;  %v355_v23 = vsub.f32 %v2627_v4, %v227_v62  ;;  %v724_v62 = vld [vmem:[#allocation3 + $0x198] sm:$0xff] }
  0xac   :  { %2493 = vrsqrt.f32 %v388_v24  ;;  %v261_v31 = vmul.f32 0.0078125, %v170_v29  ;;  %v294_v39 = vmul.f32 %v2846_v26, %v2846_v26 }
  0xad   :  { %v172_v34 = vpop.xlane.xlu1 %171  ;;  %v2488_v36 = vpop.eup %2487 }
  0xae   :  { %v325_v40 = vsub.f32 %v261_v31, %v293_v25  ;;  %v262_v44 = vmul.f32 0.0078125, %v172_v34  ;;  %v449_v9 = vmul.f32 %v2488_v36, %v353_v48  ;;  %v356_v25 = vsub.f32 %v2632_v5, %v228_v11  ;;  %v728_v5 = vld [vmem:[#allocation3 + $0x1b8] sm:$0xff] }
  0xaf   :  { %v78_v54 = vpop.xlane.xlu0 %77 }
  0xb0   :  { %v389_v58 = vadd.f32 1e-05, %v325_v40  ;;  %v326_v61 = vsub.f32 %v262_v44, %v294_v39  ;;  %v2852_v6 = vmul.f32 0.0078125, %v78_v54 }
  0xb1   :  { %v2490_v7 = vpop.eup %2489  ;;  %v80_v13 = vpop.xlane.xlu1 %79 }
  0xb2   :  { %v450_v14 = vmul.f32 %v2490_v7, %v354_v56  ;;  %2495 = vrsqrt.f32 %v389_v58  ;;  %v390_v15 = vadd.f32 1e-05, %v326_v61  ;;  %v295_v16 = vmul.f32 %v2852_v6, %v2852_v6  ;;  %v723_v56 = vld [vmem:[#allocation3 + $0x190] sm:$0xff] }
  0xb3   :  { %v2856_v17 = vmul.f32 0.0078125, %v80_v13  ;;  %v174_v18 = vpop.xlane.xlu0 %173  ;;  %v727_v58 = vld [vmem:[#allocation3 + $0x1b0] sm:$0xff] }
  0xb4   :  { %v2375_v0 = vpack.c.bf16 %v450_v14, %v449_v9  ;;  %2497 = vrsqrt.f32 %v390_v15  ;;  %v263_v30 = vmul.f32 0.0078125, %v174_v18  ;;  %v2868_v9 = vld [vmem:[#allocation3 + $0x150] sm:$0xff]  ;;  %v2329_v15 = vcombine.high %v723_v56, %v727_v58 }
  0xb5   :  { %v176_v1 = vpop.xlane.xlu1 %175  ;;  %v296_v43 = vmul.f32 %v2856_v17, %v2856_v17 }
  0xb6   :  { %2376 = vst [vmem:[#allocation2] sm:$0xff] %v2375_v0   ;;  %v327_v19 = vsub.f32 %v263_v30, %v295_v16  ;;  %v264_v20 = vmul.f32 0.0078125, %v176_v1  ;;  %v2331_v30 = vcombine.high %v724_v62, %v728_v5  ;;  %v2874_v1 = vld [vmem:[#allocation3 + $0x170] sm:$0xff] }
  0xb7   :  { %v2492_v21 = vpop.eup %2491  ;;  %v82_v24 = vpop.xlane.xlu0 %81 }
  0xb8   :  { %v391_v29 = vadd.f32 1e-05, %v327_v19  ;;  %v328_v31 = vsub.f32 %v264_v20, %v296_v43  ;;  %v2862_v34 = vmul.f32 0.0078125, %v82_v24  ;;  %v451_v39 = vmul.f32 %v2492_v21, %v355_v23  ;;  %v2876_v43 = vld [vmem:[#allocation3 + $0x158] sm:$0xff] }
  0xb9   :  { %v2494_v36 = vpop.eup %2493  ;;  %v84_v40 = vpop.xlane.xlu1 %83  ;;  %v2878_v19 = vld [vmem:[#allocation3 + $0x178] sm:$0xff]  ;;  %v357_v21 = vsub.f32 %v2643_v8, %v2842_v22  ;;  %v2328_v24 = vcombine.low %v723_v56, %v727_v58 }
  0xba   :  { %v452_v44 = vmul.f32 %v2494_v36, %v356_v25  ;;  %2499 = vrsqrt.f32 %v391_v29  ;;  %v392_v48 = vadd.f32 1e-05, %v328_v31  ;;  %v297_v54 = vmul.f32 %v2862_v34, %v2862_v34 }
  0xbb   :  { %v2866_v61 = vmul.f32 0.0078125, %v84_v40  ;;  %v178_v4 = vpop.xlane.xlu0 %177  ;;  %v2330_v25 = vcombine.low %v724_v62, %v728_v5  ;;  %v358_v29 = vsub.f32 %v2648_v12, %v2846_v26  ;;  %v2321_v12 = vcombine.high %v2868_v9, %v2874_v1 }
  0xbc   :  { %v2380_v11 = vpack.c.bf16 %v452_v44, %v451_v39  ;;  %2501 = vrsqrt.f32 %v392_v48  ;;  %v265_v7 = vmul.f32 0.0078125, %v178_v4  ;;  %v2323_v26 = vcombine.high %v2876_v43, %v2878_v19  ;;  %v708_v48 = vld [vmem:[#allocation3 + $0x118] sm:$0xff]  ;;  %v2908_v4 = vld [vmem:[#allocation3 + $0xd0] sm:$0xff] }
  0xbd   :  { %v180_v13 = vpop.xlane.xlu1 %179  ;;  %v2870_v14 = vld [vmem:[#allocation2] sm:$0xff]   ;;  %v298_v16 = vmul.f32 %v2866_v61, %v2866_v61 }
  0xbe   :  { %2452 = vst [vmem:[#allocation2 + $0x8] sm:$0xff] %v2380_v11   ;;  %v329_v18 = vsub.f32 %v265_v7, %v297_v54  ;;  %v266_v0 = vmul.f32 0.0078125, %v180_v13  ;;  %1228 = vmatmul.mubr.bf16.vlgmr.msra.gmra.mxu0 %v2870_v14  ;;  %1421 = vmatmul.mubr.bf16.vlgmr.msra.gmra.mxu1 %v2870_v14  ;;  %v712_v54 = vld [vmem:[#allocation3 + $0x138] sm:$0xff]  ;;  %v2320_v11 = vcombine.low %v2868_v9, %v2874_v1 }
  0xbf   :  { %v2496_v20 = vpop.eup %2495  ;;  %v86_v23 = vpop.xlane.xlu0 %85  ;;  %1582 = vmatpush1.bf16.msra.mxu0 %v2336_v53  ;;  %1775 = vmatpush1.bf16.msra.mxu1 %v2338_v57  ;;  %v2904_v53 = vld [vmem:[#allocation3 + $0x130] sm:$0xff]  ;;  %v2322_v7 = vcombine.low %v2876_v43, %v2878_v19  ;;  %v2924_v9 = vld [vmem:[#allocation3 + $0xf8] sm:$0xff]  ;;  %v359_v43 = vsub.f32 %v2659_v28, %v2852_v6 }
  0xc0   :  { %v393_v31 = vadd.f32 1e-05, %v329_v18  ;;  %v330_v36 = vsub.f32 %v266_v0, %v298_v16  ;;  %v2886_v39 = vmul.f32 0.0078125, %v86_v23  ;;  %v453_v22 = vmul.f32 %v2496_v20, %v357_v21  ;;  %1237 = vmatprep.mubr.bf16.mxu0 %v2584_v35  ;;  %1430 = vmatprep.mubr.bf16.mxu1 %v2584_v35  ;;  %v2922_v20 = vld [vmem:[#allocation3 + $0xd8] sm:$0xff] }
  0xc1   :  { %v2498_v8 = vpop.eup %2497  ;;  %v88_v40 = vpop.xlane.xlu1 %87  ;;  %1583 = vmatprep.subr.bf16.mxu0 %v2329_v15  ;;  %1776 = vmatprep.subr.bf16.mxu1 %v2331_v30  ;;  %v2313_v13 = vcombine.high %v2902_v52, %v2904_v53  ;;  %v2315_v0 = vcombine.high %v708_v48, %v712_v54  ;;  %v2920_v30 = vld [vmem:[#allocation3 + $0xf0] sm:$0xff]  ;;  %v2312_v21 = vcombine.low %v2902_v52, %v2904_v53  ;;  %v696_v52 = vld [vmem:[#allocation3 + $0xb8] sm:$0xff] }
  0xc2   :  { %v454_v44 = vmul.f32 %v2498_v8, %v358_v29  ;;  %2503 = vrsqrt.f32 %v393_v31  ;;  %v394_v50 = vadd.f32 1e-05, %v330_v36  ;;  %v299_v51 = vmul.f32 %v2886_v39, %v2886_v39 }
  0xc3   :  { %v2906_v55 = vmul.f32 0.0078125, %v88_v40  ;;  %v182_v57 = vpop.xlane.xlu0 %181  ;;  %1584 = vmatpush1.bf16.msra.mxu0 %v2328_v24  ;;  %1777 = vmatpush1.bf16.msra.mxu1 %v2330_v25  ;;  %v2314_v23 = vcombine.low %v708_v48, %v712_v54  ;;  %v360_v24 = vsub.f32 %v2664_v32, %v2856_v17  ;;  %v2305_v8 = vcombine.high %v2908_v4, %v2920_v30  ;;  %v2950_v48 = vld [vmem:[#allocation3 + $0x50] sm:$0xff] }
  0xc4   :  { %v2385_v56 = vpack.c.bf16 %v454_v44, %v453_v22  ;;  %2505 = vrsqrt.f32 %v394_v50  ;;  %v267_v58 = vmul.f32 0.0078125, %v182_v57  ;;  %1585 = vmatprep.subr.bf16.mxu0 %v2321_v12  ;;  %1778 = vmatprep.subr.bf16.mxu1 %v2323_v26  ;;  %v2307_v22 = vcombine.high %v2922_v20, %v2924_v9  ;;  %v2944_v12 = vld [vmem:[#allocation3 + $0x90] sm:$0xff] }
  0xc5   :  { %v184_v62 = vpop.xlane.xlu1 %183  ;;  %v2910_v5 = vld [vmem:[#allocation2 + $0x8] sm:$0xff]   ;;  %v300_v15 = vmul.f32 %v2906_v55, %v2906_v55  ;;  %v2946_v26 = vld [vmem:[#allocation3 + $0xb0] sm:$0xff] }
  0xc6   :  { %2453 = vst [vmem:[#allocation2 + $0x10] sm:$0xff] %v2385_v56   ;;  %v331_v16 = vsub.f32 %v267_v58, %v299_v51  ;;  %v268_v18 = vmul.f32 0.0078125, %v184_v62  ;;  %1238 = vmatmul.mubr.bf16.gmra.mxu0 %v2910_v5  ;;  %1431 = vmatmul.mubr.bf16.gmra.mxu1 %v2910_v5  ;;  %v692_v51 = vld [vmem:[#allocation3 + $0x98] sm:$0xff]  ;;  %v2304_v58 = vcombine.low %v2908_v4, %v2920_v30 }
  0xc7   :  { %v2500_v1 = vpop.eup %2499  ;;  %v90_v19 = vpop.xlane.xlu0 %89  ;;  %1247 = vmatprep.mubr.bf16.mxu0 %v2584_v35  ;;  %1440 = vmatprep.mubr.bf16.mxu1 %v2584_v35  ;;  %v2306_v62 = vcombine.low %v2922_v20, %v2924_v9  ;;  %v2966_v4 = vld [vmem:[#allocation3 + $0x78] sm:$0xff]  ;;  %v361_v20 = vsub.f32 %v2675_v45, %v2862_v34 }
  0xc8   :  { %v395_v25 = vadd.f32 1e-05, %v331_v16  ;;  %v332_v29 = vsub.f32 %v268_v18, %v300_v15  ;;  %v2934_v31 = vmul.f32 0.0078125, %v90_v19  ;;  %v455_v6 = vmul.f32 %v2500_v1, %v359_v43  ;;  %1586 = vmatpush1.bf16.msra.mxu0 %v2320_v11  ;;  %1779 = vmatpush1.bf16.msra.mxu1 %v2322_v7  ;;  %v2962_v18 = vld [vmem:[#allocation3 + $0x70] sm:$0xff] }
  0xc9   :  { %v2502_v28 = vpop.eup %2501  ;;  %v92_v36 = vpop.xlane.xlu1 %91  ;;  %1587 = vmatprep.subr.bf16.mxu0 %v2313_v13  ;;  %1780 = vmatprep.subr.bf16.mxu1 %v2315_v0  ;;  %v2297_v11 = vcombine.high %v2944_v12, %v2946_v26  ;;  %v2299_v16 = vcombine.high %v692_v51, %v696_v52  ;;  %v2964_v0 = vld [vmem:[#allocation3 + $0x58] sm:$0xff]  ;;  %v2296_v1 = vcombine.low %v2944_v12, %v2946_v26 }
  0xca   :  { %v456_v32 = vmul.f32 %v2502_v28, %v360_v24  ;;  %2507 = vrsqrt.f32 %v395_v25  ;;  %v396_v17 = vadd.f32 1e-05, %v332_v29  ;;  %v301_v40 = vmul.f32 %v2934_v31, %v2934_v31 }
  0xcb   :  { %v2948_v44 = vmul.f32 0.0078125, %v92_v36  ;;  %v186_v50 = vpop.xlane.xlu0 %185  ;;  %v2298_v43 = vcombine.low %v692_v51, %v696_v52  ;;  %v362_v19 = vsub.f32 %v2680_v49, %v2866_v61  ;;  %v2289_v29 = vcombine.high %v2950_v48, %v2962_v18  ;;  %v675_v36 = vld [vmem:[#allocation3 + $0x10] sm:$0xff] }
  0xcc   :  { %v2390_v53 = vpack.c.bf16 %v456_v32, %v455_v6  ;;  %2509 = vrsqrt.f32 %v396_v17  ;;  %v269_v57 = vmul.f32 0.0078125, %v186_v50  ;;  %1588 = vmatpush1.bf16.msra.mxu0 %v2312_v21  ;;  %1781 = vmatpush1.bf16.msra.mxu1 %v2314_v23  ;;  %v2291_v28 = vcombine.high %v2964_v0, %v2966_v4  ;;  %v676_v17 = vld [vmem:[#allocation3 + $0x18] sm:$0xff] }
  0xcd   :  { %v188_v54 = vpop.xlane.xlu1 %187  ;;  %v2952_v56 = vld [vmem:[#allocation2 + $0x10] sm:$0xff]   ;;  %v302_v7 = vmul.f32 %v2948_v44, %v2948_v44  ;;  %1589 = vmatprep.subr.bf16.mxu0 %v2305_v8  ;;  %1782 = vmatprep.subr.bf16.mxu1 %v2307_v22  ;;  %v2288_v52 = vcombine.low %v2950_v48, %v2962_v18  ;;  %v364_v48 = vsub.f32 %v2696_v10, %v2906_v55 }
  0xce   :  { %2454 = vst [vmem:[#allocation2 + $0x18] sm:$0xff] %v2390_v53   ;;  %v333_v13 = vsub.f32 %v269_v57, %v301_v40  ;;  %v270_v15 = vmul.f32 0.0078125, %v188_v54  ;;  %1248 = vmatmul.mubr.bf16.gmra.mxu0 %v2952_v56  ;;  %1441 = vmatmul.mubr.bf16.gmra.mxu1 %v2952_v56  ;;  %v679_v8 = vld [vmem:[#allocation3 + $0x30] sm:$0xff]  ;;  %v680_v40 = vld [vmem:[#allocation3 + $0x38] sm:$0xff]  ;;  %v2290_v53 = vcombine.low %v2964_v0, %v2966_v4 }
  0xcf   :  { %v2504_v30 = vpop.eup %2503  ;;  %v94_v9 = vpop.xlane.xlu0 %93  ;;  %1257 = vmatprep.mubr.bf16.mxu0 %v2584_v35  ;;  %1450 = vmatprep.mubr.bf16.mxu1 %v2584_v35  ;;  %v2281_v57 = vcombine.high %v675_v36, %v679_v8 }
  0xd0   :  { %v397_v21 = vadd.f32 1e-05, %v333_v13  ;;  %v334_v23 = vsub.f32 %v270_v15, %v302_v7  ;;  %v2976_v24 = vmul.f32 0.0078125, %v94_v9  ;;  %v457_v34 = vmul.f32 %v2504_v30, %v361_v20  ;;  %1590 = vmatpush1.bf16.msra.mxu0 %v2304_v58  ;;  %1783 = vmatpush1.bf16.msra.mxu1 %v2306_v62 }
  0xd1   :  { %v2506_v45 = vpop.eup %2505  ;;  %v96_v25 = vpop.xlane.xlu1 %95  ;;  %1591 = vmatprep.subr.bf16.mxu0 %v2297_v11  ;;  %1784 = vmatprep.subr.bf16.mxu1 %v2299_v16  ;;  %v2283_v11 = vcombine.high %v676_v17, %v680_v40  ;;  %v363_v13 = vsub.f32 %v2691_v3, %v2886_v39  ;;  %v2280_v3 = vcombine.low %v675_v36, %v679_v8 }
  0xd2   :  { %v458_v49 = vmul.f32 %v2506_v45, %v362_v19  ;;  %2511 = vrsqrt.f32 %v397_v21  ;;  %v398_v61 = vadd.f32 1e-05, %v334_v23  ;;  %v303_v6 = vmul.f32 %v2976_v24, %v2976_v24 }
  0xd3   :  { %v2986_v22 = vmul.f32 0.0078125, %v96_v25  ;;  %v190_v32 = vpop.xlane.xlu0 %189  ;;  %v2282_v39 = vcombine.low %v676_v17, %v680_v40 }
  0xd4   :  { %v2395_v12 = vpack.c.bf16 %v458_v49, %v457_v34  ;;  %2513 = vrsqrt.f32 %v398_v61  ;;  %v271_v26 = vmul.f32 0.0078125, %v190_v32  ;;  %1592 = vmatpush1.bf16.msra.mxu0 %v2296_v1  ;;  %1785 = vmatpush1.bf16.msra.mxu1 %v2298_v43  ;;  %v365_v49 = vsub.f32 %v2707_v27, %v2934_v31 }
  0xd5   :  { %v192_v50 = vpop.xlane.xlu1 %191  ;;  %v2988_v51 = vld [vmem:[#allocation2 + $0x18] sm:$0xff]   ;;  %v304_v54 = vmul.f32 %v2986_v22, %v2986_v22  ;;  %1593 = vmatprep.subr.bf16.mxu0 %v2289_v29  ;;  %1786 = vmatprep.subr.bf16.mxu1 %v2291_v28 }
  0xd6   :  { %2455 = vst [vmem:[#allocation2 + $0x20] sm:$0xff] %v2395_v12   ;;  %v335_v58 = vsub.f32 %v271_v26, %v303_v6  ;;  %v272_v62 = vmul.f32 0.0078125, %v192_v50  ;;  %1258 = vmatmul.mubr.bf16.gmra.mxu0 %v2988_v51  ;;  %1451 = vmatmul.mubr.bf16.gmra.mxu1 %v2988_v51  ;;  %v366_v6 = vsub.f32 %v2712_v33, %v2948_v44 }
  0xd7   :  { %v2508_v7 = vpop.eup %2507  ;;  %v98_v15 = vpop.xlane.xlu0 %97  ;;  %1267 = vmatprep.mubr.bf16.mxu0 %v2584_v35  ;;  %1460 = vmatprep.mubr.bf16.mxu1 %v2584_v35 }
  0xd8   :  { %v399_v16 = vadd.f32 1e-05, %v335_v58  ;;  %v336_v18 = vsub.f32 %v272_v62, %v304_v54  ;;  %v3002_v0 = vmul.f32 0.0078125, %v98_v15  ;;  %v459_v30 = vmul.f32 %v2508_v7, %v363_v13  ;;  %1594 = vmatpush1.bf16.msra.mxu0 %v2288_v52  ;;  %1787 = vmatpush1.bf16.msra.mxu1 %v2290_v53 }
  0xd9   :  { %v2510_v4 = vpop.eup %2509  ;;  %v100_v20 = vpop.xlane.xlu1 %99  ;;  %1595 = vmatprep.subr.bf16.mxu0 %v2281_v57  ;;  %1788 = vmatprep.subr.bf16.mxu1 %v2283_v11  ;;  %v367_v7 = vsub.f32 %v2725_v37, %v2976_v24  ;;  %v368_v15 = vsub.f32 %v2730_v38, %v2986_v22 }
  0xda   :  { %v460_v9 = vmul.f32 %v2510_v4, %v364_v48  ;;  %2515 = vrsqrt.f32 %v399_v16  ;;  %v400_v1 = vadd.f32 1e-05, %v336_v18  ;;  %v305_v10 = vmul.f32 %v3002_v0, %v3002_v0 }
  0xdb   :  { %v3008_v55 = vmul.f32 0.0078125, %v100_v20  ;;  %v194_v43 = vpop.xlane.xlu0 %193 }
  0xdc   :  { %v2400_v19 = vpack.c.bf16 %v460_v9, %v459_v30  ;;  %2517 = vrsqrt.f32 %v400_v1  ;;  %v273_v21 = vmul.f32 0.0078125, %v194_v43  ;;  %1596 = vmatpush1.bf16.msra.mxu0 %v2280_v3  ;;  %1789 = vmatpush1.bf16.msra.mxu1 %v2282_v39 }
  0xdd   :  { %v196_v23 = vpop.xlane.xlu1 %195  ;;  %v3010_v45 = vld [vmem:[#allocation2 + $0x20] sm:$0xff]   ;;  %v306_v34 = vmul.f32 %v3008_v55, %v3008_v55 }
  0xde   :  { %2456 = vst [vmem:[#allocation2 + $0x28] sm:$0xff] %v2400_v19   ;;  %v337_v25 = vsub.f32 %v273_v21, %v305_v10  ;;  %v274_v29 = vmul.f32 0.0078125, %v196_v23  ;;  %1268 = vmatmul.mubr.bf16.gmra.mxu0 %v3010_v45  ;;  %1461 = vmatmul.mubr.bf16.gmra.mxu1 %v3010_v45 }
  0xdf   :  { %v2512_v28 = vpop.eup %2511  ;;  %v102_v61 = vpop.xlane.xlu0 %101  ;;  %1277 = vmatprep.mubr.bf16.mxu0 %v2584_v35  ;;  %1470 = vmatprep.mubr.bf16.mxu1 %v2584_v35 }
  0xe0   :  { %v401_v36 = vadd.f32 1e-05, %v337_v25  ;;  %v338_v8 = vsub.f32 %v274_v29, %v306_v34  ;;  %v3020_v32 = vmul.f32 0.0078125, %v102_v61  ;;  %v461_v40 = vmul.f32 %v2512_v28, %v365_v49 }
  0xe1   :  { %v2514_v17 = vpop.eup %2513  ;;  %v104_v12 = vpop.xlane.xlu1 %103  ;;  %v369_v34 = vsub.f32 %v2741_v41, %v3002_v0  ;;  %v370_v29 = vsub.f32 %v2746_v42, %v3008_v55 }
  0xe2   :  { %v462_v27 = vmul.f32 %v2514_v17, %v366_v6  ;;  %2519 = vrsqrt.f32 %v401_v36  ;;  %v402_v31 = vadd.f32 1e-05, %v338_v8  ;;  %v307_v26 = vmul.f32 %v3020_v32, %v3020_v32 }
  0xe3   :  { %v3026_v50 = vmul.f32 0.0078125, %v104_v12  ;;  %v198_v33 = vpop.xlane.xlu0 %197 }
  0xe4   :  { %v2405_v44 = vpack.c.bf16 %v462_v27, %v461_v40  ;;  %2521 = vrsqrt.f32 %v402_v31  ;;  %v275_v52 = vmul.f32 0.0078125, %v198_v33 }
  0xe5   :  { %v200_v53 = vpop.xlane.xlu1 %199  ;;  %v3028_v57 = vld [vmem:[#allocation2 + $0x28] sm:$0xff]   ;;  %v308_v54 = vmul.f32 %v3026_v50, %v3026_v50 }
  0xe6   :  { %2457 = vst [vmem:[#allocation2 + $0x30] sm:$0xff] %v2405_v44   ;;  %v339_v58 = vsub.f32 %v275_v52, %v307_v26  ;;  %v276_v62 = vmul.f32 0.0078125, %v200_v53  ;;  %1278 = vmatmul.mubr.bf16.gmra.mxu0 %v3028_v57  ;;  %1471 = vmatmul.mubr.bf16.gmra.mxu1 %v3028_v57  ;;  %v371_v53 = vsub.f32 %v2757_v46, %v3020_v32 }
  0xe7   :  { %v2516_v11 = vpop.eup %2515  ;;  %v106_v13 = vpop.xlane.xlu0 %105  ;;  %1287 = vmatprep.mubr.bf16.mxu0 %v2584_v35  ;;  %1480 = vmatprep.mubr.bf16.mxu1 %v2584_v35 }
  0xe8   :  { %v403_v48 = vadd.f32 1e-05, %v339_v58  ;;  %v340_v16 = vsub.f32 %v276_v62, %v308_v54  ;;  %v3038_v18 = vmul.f32 0.0078125, %v106_v13  ;;  %v463_v30 = vmul.f32 %v2516_v11, %v367_v7 }
  0xe9   :  { %v2518_v4 = vpop.eup %2517  ;;  %v108_v20 = vpop.xlane.xlu1 %107  ;;  %v372_v58 = vsub.f32 %v2762_v47, %v3026_v50 }
  0xea   :  { %v464_v37 = vmul.f32 %v2518_v4, %v368_v15  ;;  %2523 = vrsqrt.f32 %v403_v48  ;;  %v404_v24 = vadd.f32 1e-05, %v340_v16  ;;  %v309_v3 = vmul.f32 %v3038_v18, %v3038_v18 }
  0xeb   :  { %v3044_v39 = vmul.f32 0.0078125, %v108_v20  ;;  %v202_v38 = vpop.xlane.xlu0 %201 }
  0xec   :  { %v2410_v22 = vpack.c.bf16 %v464_v37, %v463_v30  ;;  %2525 = vrsqrt.f32 %v404_v24  ;;  %v277_v9 = vmul.f32 0.0078125, %v202_v38 }
  0xed   :  { %v204_v1 = vpop.xlane.xlu1 %203  ;;  %v3046_v10 = vld [vmem:[#allocation2 + $0x30] sm:$0xff]   ;;  %v310_v43 = vmul.f32 %v3044_v39, %v3044_v39 }
  0xee   :  { %2458 = vst [vmem:[#allocation2 + $0x38] sm:$0xff] %v2410_v22   ;;  %v341_v19 = vsub.f32 %v277_v9, %v309_v3  ;;  %v278_v21 = vmul.f32 0.0078125, %v204_v1  ;;  %1288 = vmatmul.mubr.bf16.gmra.mxu0 %v3046_v10  ;;  %1481 = vmatmul.mubr.bf16.gmra.mxu1 %v3046_v10  ;;  %v373_v9 = vsub.f32 %v2789_v59, %v3038_v18 }
  0xef   :  { %v2520_v23 = vpop.eup %2519  ;;  %v110_v25 = vpop.xlane.xlu0 %109  ;;  %1297 = vmatprep.mubr.bf16.mxu0 %v2584_v35  ;;  %1490 = vmatprep.mubr.bf16.mxu1 %v2584_v35 }
  0xf0   :  { %v405_v28 = vadd.f32 1e-05, %v341_v19  ;;  %v342_v49 = vsub.f32 %v278_v21, %v310_v43  ;;  %v3056_v61 = vmul.f32 0.0078125, %v110_v25  ;;  %v465_v36 = vmul.f32 %v2520_v23, %v369_v34 }
  0xf1   :  { %v2522_v6 = vpop.eup %2521  ;;  %v112_v8 = vpop.xlane.xlu1 %111  ;;  %v374_v43 = vsub.f32 %v2794_v60, %v3044_v39 }
  0xf2   :  { %v466_v41 = vmul.f32 %v2522_v6, %v370_v29  ;;  %2527 = vrsqrt.f32 %v405_v28  ;;  %v406_v0 = vadd.f32 1e-05, %v342_v49  ;;  %v311_v17 = vmul.f32 %v3056_v61, %v3056_v61 }
  0xf3   :  { %v3062_v40 = vmul.f32 0.0078125, %v112_v8  ;;  %v206_v42 = vpop.xlane.xlu0 %205 }
  0xf4   :  { %v2415_v55 = vpack.c.bf16 %v466_v41, %v465_v36  ;;  %2529 = vrsqrt.f32 %v406_v0  ;;  %v279_v12 = vmul.f32 0.0078125, %v206_v42 }
  0xf5   :  { %v208_v27 = vpop.xlane.xlu1 %207  ;;  %v3064_v31 = vld [vmem:[#allocation2 + $0x38] sm:$0xff]   ;;  %v312_v26 = vmul.f32 %v3062_v40, %v3062_v40 }
  0xf6   :  { %2459 = vst [vmem:[#allocation2 + $0x40] sm:$0xff] %v2415_v55   ;;  %v343_v33 = vsub.f32 %v279_v12, %v311_v17  ;;  %v280_v44 = vmul.f32 0.0078125, %v208_v27  ;;  %1298 = vmatmul.mubr.bf16.gmra.mxu0 %v3064_v31  ;;  %1491 = vmatmul.mubr.bf16.gmra.mxu1 %v3064_v31  ;;  %v375_v55 = vsub.f32 %v2805_v63, %v3056_v61 }
  0xf7   :  { %v2524_v52 = vpop.eup %2523  ;;  %v114_v54 = vpop.xlane.xlu0 %113  ;;  %1307 = vmatprep.mubr.bf16.mxu0 %v2584_v35  ;;  %1500 = vmatprep.mubr.bf16.mxu1 %v2584_v35  ;;  %v376_v27 = vsub.f32 %v2810_v2, %v3062_v40 }
  0xf8   :  { %v407_v62 = vadd.f32 1e-05, %v343_v33  ;;  %v344_v11 = vsub.f32 %v280_v44, %v312_v26  ;;  %v3074_v7 = vmul.f32 0.0078125, %v114_v54  ;;  %v467_v15 = vmul.f32 %v2524_v52, %v371_v53 }
  0xf9   :  { %v2526_v13 = vpop.eup %2525  ;;  %v116_v48 = vpop.xlane.xlu1 %115 }
  0xfa   :  { %v468_v46 = vmul.f32 %v2526_v13, %v372_v58  ;;  %2531 = vrsqrt.f32 %v407_v62  ;;  %v408_v32 = vadd.f32 1e-05, %v344_v11  ;;  %v313_v16 = vmul.f32 %v3074_v7, %v3074_v7 }
  0xfb   :  { %v3080_v4 = vmul.f32 0.0078125, %v116_v48  ;;  %v210_v47 = vpop.xlane.xlu0 %209 }
  0xfc   :  { %v2420_v50 = vpack.c.bf16 %v468_v46, %v467_v15  ;;  %2533 = vrsqrt.f32 %v408_v32  ;;  %v281_v30 = vmul.f32 0.0078125, %v210_v47  ;;  %v2551_v47 = vld [vmem:[%s4316_s0 + $0xc0] sm:$0xff] }
  0xfd   :  { %v212_v20 = vpop.xlane.xlu1 %211  ;;  %v3082_v37 = vld [vmem:[#allocation2 + $0x40] sm:$0xff]   ;;  %v314_v24 = vmul.f32 %v3080_v4, %v3080_v4 }
  0xfe   :  { %2460 = vst [vmem:[#allocation2 + $0x48] sm:$0xff] %v2420_v50   ;;  %v345_v3 = vsub.f32 %v281_v30, %v313_v16  ;;  %v282_v38 = vmul.f32 0.0078125, %v212_v20  ;;  %1308 = vmatmul.mubr.bf16.gmra.mxu0 %v3082_v37  ;;  %1501 = vmatmul.mubr.bf16.gmra.mxu1 %v3082_v37  ;;  %v377_v50 = vsub.f32 %v2551_v47, %v3074_v7  ;;  %v2552_v20 = vld [vmem:[%s4316_s0 + $0xc8] sm:$0xff] }
  0xff   :  { %v2528_v22 = vpop.eup %2527  ;;  %v118_v1 = vpop.xlane.xlu0 %117  ;;  %1317 = vmatprep.mubr.bf16.mxu0 %v2584_v35  ;;  %1510 = vmatprep.mubr.bf16.mxu1 %v2584_v35 }
 0x100   :  { %v409_v19 = vadd.f32 1e-05, %v345_v3  ;;  %v346_v21 = vsub.f32 %v282_v38, %v314_v24  ;;  %v3092_v23 = vmul.f32 0.0078125, %v118_v1  ;;  %v469_v25 = vmul.f32 %v2528_v22, %v373_v9 }
 0x101   :  { %v2530_v34 = vpop.eup %2529  ;;  %v120_v29 = vpop.xlane.xlu1 %119  ;;  %v378_v24 = vsub.f32 %v2552_v20, %v3080_v4 }
 0x102   :  { %v470_v59 = vmul.f32 %v2530_v34, %v374_v43  ;;  %2535 = vrsqrt.f32 %v409_v19  ;;  %v410_v18 = vadd.f32 1e-05, %v346_v21  ;;  %v315_v28 = vmul.f32 %v3092_v23, %v3092_v23 }
 0x103   :  { %v3098_v49 = vmul.f32 0.0078125, %v120_v29  ;;  %v214_v60 = vpop.xlane.xlu0 %213 }
 0x104   :  { %v2425_v39 = vpack.c.bf16 %v470_v59, %v469_v25  ;;  %2537 = vrsqrt.f32 %v410_v18  ;;  %v283_v6 = vmul.f32 0.0078125, %v214_v60 }
 0x105   :  { %v216_v36 = vpop.xlane.xlu1 %215  ;;  %v3100_v8 = vld [vmem:[#allocation2 + $0x48] sm:$0xff]   ;;  %v316_v41 = vmul.f32 %v3098_v49, %v3098_v49 }
 0x106   :  { %2461 = vst [vmem:[#allocation2 + $0x50] sm:$0xff] %v2425_v39   ;;  %v347_v0 = vsub.f32 %v283_v6, %v315_v28  ;;  %v284_v17 = vmul.f32 0.0078125, %v216_v36  ;;  %1318 = vmatmul.mubr.bf16.gmra.mxu0 %v3100_v8  ;;  %1511 = vmatmul.mubr.bf16.gmra.mxu1 %v3100_v8  ;;  %v2553_v36 = vld [vmem:[%s4316_s0 + $0xd0] sm:$0xff] }
 0x107   :  { %v2532_v42 = vpop.eup %2531  ;;  %v122_v12 = vpop.xlane.xlu0 %121  ;;  %1327 = vmatprep.mubr.bf16.mxu0 %v2584_v35  ;;  %1520 = vmatprep.mubr.bf16.mxu1 %v2584_v35 }
 0x108   :  { %v411_v26 = vadd.f32 1e-05, %v347_v0  ;;  %v348_v33 = vsub.f32 %v284_v17, %v316_v41  ;;  %v3110_v44 = vmul.f32 0.0078125, %v122_v12  ;;  %v471_v53 = vmul.f32 %v2532_v42, %v375_v55  ;;  %v2554_v0 = vld [vmem:[%s4316_s0 + $0xd8] sm:$0xff] }
 0x109   :  { %v2534_v52 = vpop.eup %2533  ;;  %v124_v54 = vpop.xlane.xlu1 %123  ;;  %v379_v41 = vsub.f32 %v2553_v36, %v3092_v23  ;;  %v380_v17 = vsub.f32 %v2554_v0, %v3098_v49  ;;  %v2555_v49 = vld [vmem:[%s4316_s0 + $0xe0] sm:$0xff] }
 0x10a   :  { %v472_v63 = vmul.f32 %v2534_v52, %v376_v27  ;;  %2539 = vrsqrt.f32 %v411_v26  ;;  %v412_v61 = vadd.f32 1e-05, %v348_v33  ;;  %v317_v58 = vmul.f32 %v3110_v44, %v3110_v44 }
 0x10b   :  { %v3116_v62 = vmul.f32 0.0078125, %v124_v54  ;;  %v218_v2 = vpop.xlane.xlu0 %217  ;;  %v381_v54 = vsub.f32 %v2555_v49, %v3110_v44  ;;  %v2557_v44 = vld [vmem:[%s4316_s0 + $0xf0] sm:$0xff] }
 0x10c   :  { %v2430_v40 = vpack.c.bf16 %v472_v63, %v471_v53  ;;  %2541 = vrsqrt.f32 %v412_v61  ;;  %v285_v11 = vmul.f32 0.0078125, %v218_v2  ;;  %v2556_v63 = vld [vmem:[%s4316_s0 + $0xe8] sm:$0xff] }
 0x10d   :  { %v220_v13 = vpop.xlane.xlu1 %219  ;;  %v3118_v15 = vld [vmem:[#allocation2 + $0x50] sm:$0xff]   ;;  %v318_v48 = vmul.f32 %v3116_v62, %v3116_v62  ;;  %v382_v61 = vsub.f32 %v2556_v63, %v3116_v62 }
 0x10e   :  { %2462 = vst [vmem:[#allocation2 + $0x58] sm:$0xff] %v2430_v40   ;;  %v349_v46 = vsub.f32 %v285_v11, %v317_v58  ;;  %v286_v32 = vmul.f32 0.0078125, %v220_v13  ;;  %1328 = vmatmul.mubr.bf16.gmra.mxu0 %v3118_v15  ;;  %1521 = vmatmul.mubr.bf16.gmra.mxu1 %v3118_v15 }
 0x10f   :  { %v2536_v16 = vpop.eup %2535  ;;  %v126_v30 = vpop.xlane.xlu0 %125  ;;  %1337 = vmatprep.mubr.bf16.mxu0 %v2584_v35  ;;  %1530 = vmatprep.mubr.bf16.mxu1 %v2584_v35 }
 0x110   :  { %v413_v3 = vadd.f32 1e-05, %v349_v46  ;;  %v350_v38 = vsub.f32 %v286_v32, %v318_v48  ;;  %v3132_v22 = vmul.f32 0.0078125, %v126_v30  ;;  %v473_v9 = vmul.f32 %v2536_v16, %v377_v50  ;;  %v2558_v46 = vld [vmem:[%s4316_s0 + $0xf8] sm:$0xff] }
 0x111   :  { %v2538_v7 = vpop.eup %2537  ;;  %v128_v1 = vpop.xlane.xlu1 %127 }
 0x112   :  { %v474_v43 = vmul.f32 %v2538_v7, %v378_v24  ;;  %2543 = vrsqrt.f32 %v413_v3  ;;  %v414_v19 = vadd.f32 1e-05, %v350_v38  ;;  %v319_v21 = vmul.f32 %v3132_v22, %v3132_v22 }
 0x113   :  { %v256_v34 = vmul.f32 0.0078125, %v128_v1  ;;  %v222_v25 = vpop.xlane.xlu0 %221  ;;  %v383_v62 = vsub.f32 %v2557_v44, %v3132_v22 }
 0x114   :  { %v2435_v4 = vpack.c.bf16 %v474_v43, %v473_v9  ;;  %2545 = vrsqrt.f32 %v414_v19  ;;  %v287_v29 = vmul.f32 0.0078125, %v222_v25 }
 0x115   :  { %v224_v59 = vpop.xlane.xlu1 %223  ;;  %v3138_v18 = vld [vmem:[#allocation2 + $0x58] sm:$0xff]   ;;  %v320_v28 = vmul.f32 %v256_v34, %v256_v34  ;;  %v384_v32 = vsub.f32 %v2558_v46, %v256_v34 }
 0x116   :  { %2463 = vst [vmem:[#allocation2 + $0x60] sm:$0xff] %v2435_v4   ;;  %v351_v60 = vsub.f32 %v287_v29, %v319_v21  ;;  %v288_v39 = vmul.f32 0.0078125, %v224_v59  ;;  %1338 = vmatmul.mubr.bf16.gmra.mxu0 %v3138_v18  ;;  %1531 = vmatmul.mubr.bf16.gmra.mxu1 %v3138_v18 }
 0x117   :  { %v2540_v6 = vpop.eup %2539  ;;  %1347 = vmatprep.mubr.bf16.mxu0 %v2584_v35  ;;  %1540 = vmatprep.mubr.bf16.mxu1 %v2584_v35 }
 0x118   :  { %v415_v42 = vadd.f32 1e-05, %v351_v60  ;;  %v352_v55 = vsub.f32 %v288_v39, %v320_v28  ;;  %v475_v27 = vmul.f32 %v2540_v6, %v379_v41 }
 0x119   :  { %v2542_v12 = vpop.eup %2541 }
 0x11a   :  { %v476_v26 = vmul.f32 %v2542_v12, %v380_v17  ;;  %2547 = vrsqrt.f32 %v415_v42  ;;  %v416_v33 = vadd.f32 1e-05, %v352_v55 }
 0x11c   :  { %v2440_v52 = vpack.c.bf16 %v476_v26, %v475_v27  ;;  %2549 = vrsqrt.f32 %v416_v33 }
 0x11d   :  { %v3152_v23 = vld [vmem:[#allocation2 + $0x60] sm:$0xff]  }
 0x11e   :  { %2464 = vst [vmem:[#allocation2 + $0x68] sm:$0xff] %v2440_v52   ;;  %1348 = vmatmul.mubr.bf16.gmra.mxu0 %v3152_v23  ;;  %1541 = vmatmul.mubr.bf16.gmra.mxu1 %v3152_v23 }
 0x11f   :  { %v2544_v53 = vpop.eup %2543  ;;  %1357 = vmatprep.mubr.bf16.mxu0 %v2584_v35  ;;  %1550 = vmatprep.mubr.bf16.mxu1 %v2584_v35 }
 0x120   :  { %v477_v2 = vmul.f32 %v2544_v53, %v381_v54 }
 0x121   :  { %v2546_v58 = vpop.eup %2545 }
 0x122   :  { %v478_v40 = vmul.f32 %v2546_v58, %v382_v61 }
 0x124   :  { %v2445_v11 = vpack.c.bf16 %v478_v40, %v477_v2 }
 0x125   :  { %v3166_v13 = vld [vmem:[#allocation2 + $0x68] sm:$0xff]  }
 0x126   :  { %2465 = vst [vmem:[#allocation2 + $0x70] sm:$0xff] %v2445_v11   ;;  %1358 = vmatmul.mubr.bf16.gmra.mxu0 %v3166_v13  ;;  %1551 = vmatmul.mubr.bf16.gmra.mxu1 %v3166_v13 }
 0x127   :  { %v2548_v48 = vpop.eup %2547  ;;  %1367 = vmatprep.mubr.bf16.mxu0 %v2584_v35  ;;  %1560 = vmatprep.mubr.bf16.mxu1 %v2584_v35 }
 0x128   :  { %v479_v47 = vmul.f32 %v2548_v48, %v383_v62 }
 0x129   :  { %v2550_v16 = vpop.eup %2549 }
 0x12a   :  { %v480_v50 = vmul.f32 %v2550_v16, %v384_v32 }
 0x12c   :  { %v2450_v30 = vpack.c.bf16 %v480_v50, %v479_v47 }
 0x12d   :  { %v3179_v20 = vld [vmem:[#allocation2 + $0x70] sm:$0xff]  }
 0x12e   :  { %2466 = vst [vmem:[#allocation2 + $0x78] sm:$0xff] %v2450_v30   ;;  %1368 = vmatmul.mubr.bf16.gmra.mxu0 %v3179_v20  ;;  %1561 = vmatmul.mubr.bf16.gmra.mxu1 %v3179_v20 }
 0x12f   :  { %1377 = vmatprep.mubr.bf16.mxu0 %v2584_v35  ;;  %1570 = vmatprep.mubr.bf16.mxu1 %v2584_v35 }
 0x135   :  { %v3185_v24 = vld [vmem:[#allocation2 + $0x78] sm:$0xff]  }
 0x136   :  { %1378 = vmatmul.mubr.bf16.gmra.mxu0 %v3185_v24  ;;  %1571 = vmatmul.mubr.bf16.gmra.mxu1 %v3185_v24 }
 0x137   :  { %1613 = vmatprep.mubr.bf16.mxu0 %v2584_v35  ;;  %1806 = vmatprep.mubr.bf16.mxu1 %v2584_v35 }
 0x13e   :  { %1614 = vmatmul.mubr.bf16.vlgmr.msra.gmra.mxu0 %v2870_v14  ;;  %1807 = vmatmul.mubr.bf16.vlgmr.msra.gmra.mxu1 %v2870_v14  ;;  %v739_v14 = vlaneseq }
 0x13f   :  { %1623 = vmatprep.mubr.bf16.mxu0 %v2584_v35  ;;  %1816 = vmatprep.mubr.bf16.mxu1 %v2584_v35 }
 0x146   :  { %1624 = vmatmul.mubr.bf16.gmra.mxu0 %v2910_v5  ;;  %1817 = vmatmul.mubr.bf16.gmra.mxu1 %v2910_v5  ;;  %v3219_v5 = vshrl.u32 %v739_v14, 7 }
 0x147   :  { %1633 = vmatprep.mubr.bf16.mxu0 %v2584_v35  ;;  %1826 = vmatprep.mubr.bf16.mxu1 %v2584_v35 }
 0x14e   :  { %1634 = vmatmul.mubr.bf16.gmra.mxu0 %v2952_v56  ;;  %1827 = vmatmul.mubr.bf16.gmra.mxu1 %v2952_v56  ;;  %v741_v56 = vsub.s32 0, %v3219_v5 }
 0x14f   :  { %1643 = vmatprep.mubr.bf16.mxu0 %v2584_v35  ;;  %1836 = vmatprep.mubr.bf16.mxu1 %v2584_v35 }
 0x156   :  { %1644 = vmatmul.mubr.bf16.gmra.mxu0 %v2988_v51  ;;  %1837 = vmatmul.mubr.bf16.gmra.mxu1 %v2988_v51  ;;  %v749_v51 = vsub.s32 2, %v3219_v5 }
 0x157   :  { %1653 = vmatprep.mubr.bf16.mxu0 %v2584_v35  ;;  %1846 = vmatprep.mubr.bf16.mxu1 %v2584_v35 }
 0x15e   :  { %1654 = vmatmul.mubr.bf16.gmra.mxu0 %v3010_v45  ;;  %1847 = vmatmul.mubr.bf16.gmra.mxu1 %v3010_v45  ;;  %v3230_v45 = vld [vmem:[%s4318_s2] sm:$0xff] }
 0x15f   :  { %1663 = vmatprep.mubr.bf16.mxu0 %v2584_v35  ;;  %1856 = vmatprep.mubr.bf16.mxu1 %v2584_v35  ;;  %v3235_v3 = vrot.slane %v3230_v45, %v741_v56 }
 0x166   :  { %1664 = vmatmul.mubr.bf16.gmra.mxu0 %v3028_v57  ;;  %1857 = vmatmul.mubr.bf16.gmra.mxu1 %v3028_v57  ;;  %v745_v57 = vsub.s32 1, %v3219_v5 }
 0x167   :  { %1673 = vmatprep.mubr.bf16.mxu0 %v2584_v35  ;;  %1866 = vmatprep.mubr.bf16.mxu1 %v2584_v35 }
 0x168   :  { %v3241_v38 = vrot.slane %v3230_v45, %v745_v57 }
 0x16e   :  { %1674 = vmatmul.mubr.bf16.gmra.mxu0 %v3046_v10  ;;  %1867 = vmatmul.mubr.bf16.gmra.mxu1 %v3046_v10  ;;  %v753_v10 = vsub.s32 3, %v3219_v5 }
 0x16f   :  { %1683 = vmatprep.mubr.bf16.mxu0 %v2584_v35  ;;  %1876 = vmatprep.mubr.bf16.mxu1 %v2584_v35 }
 0x170   :  { %v3244_v22 = vrot.slane %v3230_v45, %v753_v10 }
 0x176   :  { %1684 = vmatmul.mubr.bf16.gmra.mxu0 %v3064_v31  ;;  %1877 = vmatmul.mubr.bf16.gmra.mxu1 %v3064_v31  ;;  %v3238_v31 = vrot.slane %v3230_v45, %v749_v51 }
 0x177   :  { %1693 = vmatprep.mubr.bf16.mxu0 %v2584_v35  ;;  %1886 = vmatprep.mubr.bf16.mxu1 %v2584_v35 }
 0x17e   :  { %v1229_v7 = vpop.f32.mrf.mxu0  ;;  %v1422_v9 = vpop.f32.mrf.mxu1  ;;  %1694 = vmatmul.mubr.bf16.gmra.mxu0 %v3082_v37  ;;  %1887 = vmatmul.mubr.bf16.gmra.mxu1 %v3082_v37 }
 0x17f   :  { %v1230_v1 = vadd.f32 %v1229_v7, %v3235_v3  ;;  %v1423_v43 = vadd.f32 %v1422_v9, %v3238_v31  ;;  %1703 = vmatprep.mubr.bf16.mxu0 %v2584_v35  ;;  %1896 = vmatprep.mubr.bf16.mxu1 %v2584_v35 }
 0x180   :  { %v1231_v19 = vpop.f32.mrf.mxu0  ;;  %v1424_v21 = vpop.f32.mrf.mxu1 }
 0x181   :  { %1967 = vst [vmem:[%s4319_s3] sm:$0xff] %v1230_v1  ;;  %1969 = vst [vmem:[%s4319_s3 + $0x10] sm:$0xff] %v1423_v43  ;;  %v1232_v37 = vadd.f32 %v1231_v19, %v3241_v38  ;;  %v1425_v34 = vadd.f32 %v1424_v21, %v3244_v22 }
 0x182   :  { %v1233_v25 = vpop.f32.mrf.mxu0  ;;  %v1426_v4 = vpop.f32.mrf.mxu1 }
 0x183   :  { %1968 = vst [vmem:[%s4319_s3 + $0x8] sm:$0xff] %v1232_v37  ;;  %1970 = vst [vmem:[%s4319_s3 + $0x18] sm:$0xff] %v1425_v34  ;;  %v1234_v29 = vadd.f32 %v1233_v25, %v3235_v3  ;;  %v1427_v59 = vadd.f32 %v1426_v4, %v3238_v31 }
 0x184   :  { %v1235_v28 = vpop.f32.mrf.mxu0  ;;  %v1428_v60 = vpop.f32.mrf.mxu1 }
 0x185   :  { %1975 = vst [vmem:[%s4319_s3 + $0x40] sm:$0xff] %v1234_v29  ;;  %1977 = vst [vmem:[%s4319_s3 + $0x50] sm:$0xff] %v1427_v59  ;;  %v1236_v39 = vadd.f32 %v1235_v28, %v3241_v38  ;;  %v1429_v6 = vadd.f32 %v1428_v60, %v3244_v22 }
 0x186   :  { %v1239_v36 = vpop.f32.mrf.mxu0  ;;  %v1432_v41 = vpop.f32.mrf.mxu1  ;;  %1704 = vmatmul.mubr.bf16.gmra.mxu0 %v3100_v8  ;;  %1897 = vmatmul.mubr.bf16.gmra.mxu1 %v3100_v8 }
 0x187   :  { %1976 = vst [vmem:[%s4319_s3 + $0x48] sm:$0xff] %v1236_v39  ;;  %1978 = vst [vmem:[%s4319_s3 + $0x58] sm:$0xff] %v1429_v6  ;;  %v1240_v0 = vadd.f32 %v1239_v36, %v3235_v3  ;;  %v1433_v17 = vadd.f32 %v1432_v41, %v3238_v31  ;;  %1713 = vmatprep.mubr.bf16.mxu0 %v2584_v35  ;;  %1906 = vmatprep.mubr.bf16.mxu1 %v2584_v35 }
 0x188   :  { %v1241_v42 = vpop.f32.mrf.mxu0  ;;  %v1434_v55 = vpop.f32.mrf.mxu1 }
 0x189   :  { %1983 = vst [vmem:[%s4319_s3 + $0x80] sm:$0xff] %v1240_v0  ;;  %1985 = vst [vmem:[%s4319_s3 + $0x90] sm:$0xff] %v1433_v17  ;;  %v1242_v8 = vadd.f32 %v1241_v42, %v3241_v38  ;;  %v1435_v12 = vadd.f32 %v1434_v55, %v3244_v22 }
 0x18a   :  { %v1243_v27 = vpop.f32.mrf.mxu0  ;;  %v1436_v26 = vpop.f32.mrf.mxu1 }
 0x18b   :  { %1984 = vst [vmem:[%s4319_s3 + $0x88] sm:$0xff] %v1242_v8  ;;  %1986 = vst [vmem:[%s4319_s3 + $0x98] sm:$0xff] %v1435_v12  ;;  %v1244_v33 = vadd.f32 %v1243_v27, %v3235_v3  ;;  %v1437_v52 = vadd.f32 %v1436_v26, %v3238_v31 }
 0x18c   :  { %v1245_v53 = vpop.f32.mrf.mxu0  ;;  %v1438_v49 = vpop.f32.mrf.mxu1 }
 0x18d   :  { %1991 = vst [vmem:[%s4319_s3 + $0xc0] sm:$0xff] %v1244_v33  ;;  %1993 = vst [vmem:[%s4319_s3 + $0xd0] sm:$0xff] %v1437_v52  ;;  %v1246_v54 = vadd.f32 %v1245_v53, %v3241_v38  ;;  %v1439_v63 = vadd.f32 %v1438_v49, %v3244_v22 }
 0x18e   :  { %v1249_v61 = vpop.f32.mrf.mxu0  ;;  %v1442_v58 = vpop.f32.mrf.mxu1  ;;  %1714 = vmatmul.mubr.bf16.gmra.mxu0 %v3118_v15  ;;  %1907 = vmatmul.mubr.bf16.gmra.mxu1 %v3118_v15 }
 0x18f   :  { %1992 = vst [vmem:[%s4319_s3 + $0xc8] sm:$0xff] %v1246_v54  ;;  %1994 = vst [vmem:[%s4319_s3 + $0xd8] sm:$0xff] %v1439_v63  ;;  %v1250_v2 = vadd.f32 %v1249_v61, %v3235_v3  ;;  %v1443_v40 = vadd.f32 %v1442_v58, %v3238_v31  ;;  %1723 = vmatprep.mubr.bf16.mxu0 %v2584_v35  ;;  %1916 = vmatprep.mubr.bf16.mxu1 %v2584_v35 }
 0x190   :  { %v1251_v11 = vpop.f32.mrf.mxu0  ;;  %v1444_v48 = vpop.f32.mrf.mxu1 }
 0x191   :  { %1999 = vst [vmem:[%s4319_s3 + $0x100] sm:$0xff] %v1250_v2  ;;  %2001 = vst [vmem:[%s4319_s3 + $0x110] sm:$0xff] %v1443_v40  ;;  %v1252_v15 = vadd.f32 %v1251_v11, %v3241_v38  ;;  %v1445_v44 = vadd.f32 %v1444_v48, %v3244_v22 }
 0x192   :  { %v1253_v62 = vpop.f32.mrf.mxu0  ;;  %v1446_v46 = vpop.f32.mrf.mxu1 }
 0x193   :  { %2000 = vst [vmem:[%s4319_s3 + $0x108] sm:$0xff] %v1252_v15  ;;  %2002 = vst [vmem:[%s4319_s3 + $0x118] sm:$0xff] %v1445_v44  ;;  %v1254_v32 = vadd.f32 %v1253_v62, %v3235_v3  ;;  %v1447_v16 = vadd.f32 %v1446_v46, %v3238_v31 }
 0x194   :  { %v1255_v47 = vpop.f32.mrf.mxu0  ;;  %v1448_v50 = vpop.f32.mrf.mxu1 }
 0x195   :  { %2007 = vst [vmem:[%s4319_s3 + $0x140] sm:$0xff] %v1254_v32  ;;  %2009 = vst [vmem:[%s4319_s3 + $0x150] sm:$0xff] %v1447_v16  ;;  %v1256_v30 = vadd.f32 %v1255_v47, %v3241_v38  ;;  %v1449_v14 = vadd.f32 %v1448_v50, %v3244_v22 }
 0x196   :  { %v1259_v56 = vpop.f32.mrf.mxu0  ;;  %v1452_v51 = vpop.f32.mrf.mxu1  ;;  %1724 = vmatmul.mubr.bf16.gmra.mxu0 %v3138_v18  ;;  %1917 = vmatmul.mubr.bf16.gmra.mxu1 %v3138_v18 }
 0x197   :  { %2008 = vst [vmem:[%s4319_s3 + $0x148] sm:$0xff] %v1256_v30  ;;  %2010 = vst [vmem:[%s4319_s3 + $0x158] sm:$0xff] %v1449_v14  ;;  %v1260_v57 = vadd.f32 %v1259_v56, %v3235_v3  ;;  %v1453_v10 = vadd.f32 %v1452_v51, %v3238_v31  ;;  %1733 = vmatprep.mubr.bf16.mxu0 %v2584_v35  ;;  %1926 = vmatprep.mubr.bf16.mxu1 %v2584_v35 }
 0x198   :  { %v1261_v7 = vpop.f32.mrf.mxu0  ;;  %v1454_v9 = vpop.f32.mrf.mxu1 }
 0x199   :  { %2015 = vst [vmem:[%s4319_s3 + $0x180] sm:$0xff] %v1260_v57  ;;  %2017 = vst [vmem:[%s4319_s3 + $0x190] sm:$0xff] %v1453_v10  ;;  %v1262_v18 = vadd.f32 %v1261_v7, %v3241_v38  ;;  %v1455_v1 = vadd.f32 %v1454_v9, %v3244_v22 }
 0x19a   :  { %v1263_v43 = vpop.f32.mrf.mxu0  ;;  %v1456_v19 = vpop.f32.mrf.mxu1 }
 0x19b   :  { %2016 = vst [vmem:[%s4319_s3 + $0x188] sm:$0xff] %v1262_v18  ;;  %2018 = vst [vmem:[%s4319_s3 + $0x198] sm:$0xff] %v1455_v1  ;;  %v1264_v21 = vadd.f32 %v1263_v43, %v3235_v3  ;;  %v1457_v37 = vadd.f32 %v1456_v19, %v3238_v31 }
 0x19c   :  { %v1265_v34 = vpop.f32.mrf.mxu0  ;;  %v1458_v25 = vpop.f32.mrf.mxu1 }
 0x19d   :  { %2023 = vst [vmem:[%s4319_s3 + $0x1c0] sm:$0xff] %v1264_v21  ;;  %2025 = vst [vmem:[%s4319_s3 + $0x1d0] sm:$0xff] %v1457_v37  ;;  %v1266_v4 = vadd.f32 %v1265_v34, %v3241_v38  ;;  %v1459_v29 = vadd.f32 %v1458_v25, %v3244_v22 }
 0x19e   :  { %v1269_v59 = vpop.f32.mrf.mxu0  ;;  %v1462_v28 = vpop.f32.mrf.mxu1  ;;  %1734 = vmatmul.mubr.bf16.gmra.mxu0 %v3152_v23  ;;  %1927 = vmatmul.mubr.bf16.gmra.mxu1 %v3152_v23 }
 0x19f   :  { %2024 = vst [vmem:[%s4319_s3 + $0x1c8] sm:$0xff] %v1266_v4  ;;  %2026 = vst [vmem:[%s4319_s3 + $0x1d8] sm:$0xff] %v1459_v29  ;;  %v1270_v60 = vadd.f32 %v1269_v59, %v3235_v3  ;;  %v1463_v39 = vadd.f32 %v1462_v28, %v3238_v31  ;;  %1743 = vmatprep.mubr.bf16.mxu0 %v2584_v35  ;;  %1936 = vmatprep.mubr.bf16.mxu1 %v2584_v35 }
 0x1a0   :  { %v1271_v6 = vpop.f32.mrf.mxu0  ;;  %v1464_v36 = vpop.f32.mrf.mxu1 }
 0x1a1   :  { %2031 = vst [vmem:[%s4319_s3 + $0x200] sm:$0xff] %v1270_v60  ;;  %2033 = vst [vmem:[%s4319_s3 + $0x210] sm:$0xff] %v1463_v39  ;;  %v1272_v23 = vadd.f32 %v1271_v6, %v3241_v38  ;;  %v1465_v41 = vadd.f32 %v1464_v36, %v3244_v22 }
 0x1a2   :  { %v1273_v0 = vpop.f32.mrf.mxu0  ;;  %v1466_v17 = vpop.f32.mrf.mxu1 }
 0x1a3   :  { %2032 = vst [vmem:[%s4319_s3 + $0x208] sm:$0xff] %v1272_v23  ;;  %2034 = vst [vmem:[%s4319_s3 + $0x218] sm:$0xff] %v1465_v41  ;;  %v1274_v42 = vadd.f32 %v1273_v0, %v3235_v3  ;;  %v1467_v55 = vadd.f32 %v1466_v17, %v3238_v31 }
 0x1a4   :  { %v1275_v8 = vpop.f32.mrf.mxu0  ;;  %v1468_v12 = vpop.f32.mrf.mxu1 }
 0x1a5   :  { %2039 = vst [vmem:[%s4319_s3 + $0x240] sm:$0xff] %v1274_v42  ;;  %2041 = vst [vmem:[%s4319_s3 + $0x250] sm:$0xff] %v1467_v55  ;;  %v1276_v27 = vadd.f32 %v1275_v8, %v3241_v38  ;;  %v1469_v26 = vadd.f32 %v1468_v12, %v3244_v22 }
 0x1a6   :  { %v1279_v33 = vpop.f32.mrf.mxu0  ;;  %v1472_v52 = vpop.f32.mrf.mxu1  ;;  %1744 = vmatmul.mubr.bf16.gmra.mxu0 %v3166_v13  ;;  %1937 = vmatmul.mubr.bf16.gmra.mxu1 %v3166_v13 }
 0x1a7   :  { %2040 = vst [vmem:[%s4319_s3 + $0x248] sm:$0xff] %v1276_v27  ;;  %2042 = vst [vmem:[%s4319_s3 + $0x258] sm:$0xff] %v1469_v26  ;;  %v1280_v53 = vadd.f32 %v1279_v33, %v3235_v3  ;;  %v1473_v49 = vadd.f32 %v1472_v52, %v3238_v31  ;;  %1753 = vmatprep.mubr.bf16.mxu0 %v2584_v35  ;;  %1946 = vmatprep.mubr.bf16.mxu1 %v2584_v35 }
 0x1a8   :  { %v1281_v54 = vpop.f32.mrf.mxu0  ;;  %v1474_v63 = vpop.f32.mrf.mxu1 }
 0x1a9   :  { %2047 = vst [vmem:[%s4319_s3 + $0x280] sm:$0xff] %v1280_v53  ;;  %2049 = vst [vmem:[%s4319_s3 + $0x290] sm:$0xff] %v1473_v49  ;;  %v1282_v13 = vadd.f32 %v1281_v54, %v3241_v38  ;;  %v1475_v61 = vadd.f32 %v1474_v63, %v3244_v22 }
 0x1aa   :  { %v1283_v58 = vpop.f32.mrf.mxu0  ;;  %v1476_v2 = vpop.f32.mrf.mxu1 }
 0x1ab   :  { %2048 = vst [vmem:[%s4319_s3 + $0x288] sm:$0xff] %v1282_v13  ;;  %2050 = vst [vmem:[%s4319_s3 + $0x298] sm:$0xff] %v1475_v61  ;;  %v1284_v40 = vadd.f32 %v1283_v58, %v3235_v3  ;;  %v1477_v11 = vadd.f32 %v1476_v2, %v3238_v31 }
 0x1ac   :  { %v1285_v48 = vpop.f32.mrf.mxu0  ;;  %v1478_v15 = vpop.f32.mrf.mxu1 }
 0x1ad   :  { %2055 = vst [vmem:[%s4319_s3 + $0x2c0] sm:$0xff] %v1284_v40  ;;  %2057 = vst [vmem:[%s4319_s3 + $0x2d0] sm:$0xff] %v1477_v11  ;;  %v1286_v44 = vadd.f32 %v1285_v48, %v3241_v38  ;;  %v1479_v62 = vadd.f32 %v1478_v15, %v3244_v22 }
 0x1ae   :  { %v1289_v46 = vpop.f32.mrf.mxu0  ;;  %v1482_v32 = vpop.f32.mrf.mxu1  ;;  %1754 = vmatmul.mubr.bf16.gmra.mxu0 %v3179_v20  ;;  %1947 = vmatmul.mubr.bf16.gmra.mxu1 %v3179_v20 }
 0x1af   :  { %2056 = vst [vmem:[%s4319_s3 + $0x2c8] sm:$0xff] %v1286_v44  ;;  %2058 = vst [vmem:[%s4319_s3 + $0x2d8] sm:$0xff] %v1479_v62  ;;  %v1290_v16 = vadd.f32 %v1289_v46, %v3235_v3  ;;  %v1483_v47 = vadd.f32 %v1482_v32, %v3238_v31  ;;  %1763 = vmatprep.mubr.bf16.mxu0 %v2584_v35  ;;  %1956 = vmatprep.mubr.bf16.mxu1 %v2584_v35 }
 0x1b0   :  { %v1291_v50 = vpop.f32.mrf.mxu0  ;;  %v1484_v30 = vpop.f32.mrf.mxu1 }
 0x1b1   :  { %2063 = vst [vmem:[%s4319_s3 + $0x300] sm:$0xff] %v1290_v16  ;;  %2065 = vst [vmem:[%s4319_s3 + $0x310] sm:$0xff] %v1483_v47  ;;  %v1292_v20 = vadd.f32 %v1291_v50, %v3241_v38  ;;  %v1485_v14 = vadd.f32 %v1484_v30, %v3244_v22 }
 0x1b2   :  { %v1293_v56 = vpop.f32.mrf.mxu0  ;;  %v1486_v51 = vpop.f32.mrf.mxu1 }
 0x1b3   :  { %2064 = vst [vmem:[%s4319_s3 + $0x308] sm:$0xff] %v1292_v20  ;;  %2066 = vst [vmem:[%s4319_s3 + $0x318] sm:$0xff] %v1485_v14  ;;  %v1294_v35 = vadd.f32 %v1293_v56, %v3235_v3  ;;  %v1487_v57 = vadd.f32 %v1486_v51, %v3238_v31 }
 0x1b4   :  { %v1295_v10 = vpop.f32.mrf.mxu0  ;;  %v1488_v7 = vpop.f32.mrf.mxu1 }
 0x1b5   :  { %2071 = vst [vmem:[%s4319_s3 + $0x340] sm:$0xff] %v1294_v35  ;;  %2073 = vst [vmem:[%s4319_s3 + $0x350] sm:$0xff] %v1487_v57  ;;  %v1296_v9 = vadd.f32 %v1295_v10, %v3241_v38  ;;  %v1489_v18 = vadd.f32 %v1488_v7, %v3244_v22 }
 0x1b6   :  { %v1299_v1 = vpop.f32.mrf.mxu0  ;;  %v1492_v43 = vpop.f32.mrf.mxu1  ;;  %1764 = vmatmul.mubr.bf16.gmra.mxu0 %v3185_v24  ;;  %1957 = vmatmul.mubr.bf16.gmra.mxu1 %v3185_v24 }
 0x1b7   :  { %2072 = vst [vmem:[%s4319_s3 + $0x348] sm:$0xff] %v1296_v9  ;;  %2074 = vst [vmem:[%s4319_s3 + $0x358] sm:$0xff] %v1489_v18  ;;  %v1300_v19 = vadd.f32 %v1299_v1, %v3235_v3  ;;  %v1493_v21 = vadd.f32 %v1492_v43, %v3238_v31 }
 0x1b8   :  { %v1301_v37 = vpop.f32.mrf.mxu0  ;;  %v1494_v34 = vpop.f32.mrf.mxu1 }
 0x1b9   :  { %2079 = vst [vmem:[%s4319_s3 + $0x380] sm:$0xff] %v1300_v19  ;;  %2081 = vst [vmem:[%s4319_s3 + $0x390] sm:$0xff] %v1493_v21  ;;  %v1302_v24 = vadd.f32 %v1301_v37, %v3241_v38  ;;  %v1495_v25 = vadd.f32 %v1494_v34, %v3244_v22 }
 0x1ba   :  { %v1303_v4 = vpop.f32.mrf.mxu0  ;;  %v1496_v29 = vpop.f32.mrf.mxu1 }
 0x1bb   :  { %2080 = vst [vmem:[%s4319_s3 + $0x388] sm:$0xff] %v1302_v24  ;;  %2082 = vst [vmem:[%s4319_s3 + $0x398] sm:$0xff] %v1495_v25  ;;  %v1304_v59 = vadd.f32 %v1303_v4, %v3235_v3  ;;  %v1497_v28 = vadd.f32 %v1496_v29, %v3238_v31 }
 0x1bc   :  { %v1305_v60 = vpop.f32.mrf.mxu0  ;;  %v1498_v39 = vpop.f32.mrf.mxu1 }
 0x1bd   :  { %2087 = vst [vmem:[%s4319_s3 + $0x3c0] sm:$0xff] %v1304_v59  ;;  %2089 = vst [vmem:[%s4319_s3 + $0x3d0] sm:$0xff] %v1497_v28  ;;  %v1306_v6 = vadd.f32 %v1305_v60, %v3241_v38  ;;  %v1499_v36 = vadd.f32 %v1498_v39, %v3244_v22 }
 0x1be   :  { %v1309_v23 = vpop.f32.mrf.mxu0  ;;  %v1502_v41 = vpop.f32.mrf.mxu1 }
 0x1bf   :  { %2088 = vst [vmem:[%s4319_s3 + $0x3c8] sm:$0xff] %v1306_v6  ;;  %2090 = vst [vmem:[%s4319_s3 + $0x3d8] sm:$0xff] %v1499_v36  ;;  %v1310_v0 = vadd.f32 %v1309_v23, %v3235_v3  ;;  %v1503_v17 = vadd.f32 %v1502_v41, %v3238_v31 }
 0x1c0   :  { %v1311_v42 = vpop.f32.mrf.mxu0  ;;  %v1504_v55 = vpop.f32.mrf.mxu1 }
 0x1c1   :  { %2095 = vst [vmem:[%s4319_s3 + $0x400] sm:$0xff] %v1310_v0  ;;  %2097 = vst [vmem:[%s4319_s3 + $0x410] sm:$0xff] %v1503_v17  ;;  %v1312_v8 = vadd.f32 %v1311_v42, %v3241_v38  ;;  %v1505_v12 = vadd.f32 %v1504_v55, %v3244_v22 }
 0x1c2   :  { %v1313_v27 = vpop.f32.mrf.mxu0  ;;  %v1506_v26 = vpop.f32.mrf.mxu1 }
 0x1c3   :  { %2096 = vst [vmem:[%s4319_s3 + $0x408] sm:$0xff] %v1312_v8  ;;  %2098 = vst [vmem:[%s4319_s3 + $0x418] sm:$0xff] %v1505_v12  ;;  %v1314_v33 = vadd.f32 %v1313_v27, %v3235_v3  ;;  %v1507_v52 = vadd.f32 %v1506_v26, %v3238_v31 }
 0x1c4   :  { %v1315_v53 = vpop.f32.mrf.mxu0  ;;  %v1508_v49 = vpop.f32.mrf.mxu1 }
 0x1c5   :  { %2103 = vst [vmem:[%s4319_s3 + $0x440] sm:$0xff] %v1314_v33  ;;  %2105 = vst [vmem:[%s4319_s3 + $0x450] sm:$0xff] %v1507_v52  ;;  %v1316_v54 = vadd.f32 %v1315_v53, %v3241_v38  ;;  %v1509_v63 = vadd.f32 %v1508_v49, %v3244_v22 }
 0x1c6   :  { %v1319_v13 = vpop.f32.mrf.mxu0  ;;  %v1512_v61 = vpop.f32.mrf.mxu1 }
 0x1c7   :  { %2104 = vst [vmem:[%s4319_s3 + $0x448] sm:$0xff] %v1316_v54  ;;  %2106 = vst [vmem:[%s4319_s3 + $0x458] sm:$0xff] %v1509_v63  ;;  %v1320_v58 = vadd.f32 %v1319_v13, %v3235_v3  ;;  %v1513_v2 = vadd.f32 %v1512_v61, %v3238_v31 }
 0x1c8   :  { %v1321_v40 = vpop.f32.mrf.mxu0  ;;  %v1514_v11 = vpop.f32.mrf.mxu1 }
 0x1c9   :  { %2111 = vst [vmem:[%s4319_s3 + $0x480] sm:$0xff] %v1320_v58  ;;  %2113 = vst [vmem:[%s4319_s3 + $0x490] sm:$0xff] %v1513_v2  ;;  %v1322_v48 = vadd.f32 %v1321_v40, %v3241_v38  ;;  %v1515_v15 = vadd.f32 %v1514_v11, %v3244_v22 }
 0x1ca   :  { %v1323_v44 = vpop.f32.mrf.mxu0  ;;  %v1516_v62 = vpop.f32.mrf.mxu1 }
 0x1cb   :  { %2112 = vst [vmem:[%s4319_s3 + $0x488] sm:$0xff] %v1322_v48  ;;  %2114 = vst [vmem:[%s4319_s3 + $0x498] sm:$0xff] %v1515_v15  ;;  %v1324_v46 = vadd.f32 %v1323_v44, %v3235_v3  ;;  %v1517_v32 = vadd.f32 %v1516_v62, %v3238_v31 }
 0x1cc   :  { %v1325_v16 = vpop.f32.mrf.mxu0  ;;  %v1518_v47 = vpop.f32.mrf.mxu1 }
 0x1cd   :  { %2119 = vst [vmem:[%s4319_s3 + $0x4c0] sm:$0xff] %v1324_v46  ;;  %2121 = vst [vmem:[%s4319_s3 + $0x4d0] sm:$0xff] %v1517_v32  ;;  %v1326_v50 = vadd.f32 %v1325_v16, %v3241_v38  ;;  %v1519_v30 = vadd.f32 %v1518_v47, %v3244_v22 }
 0x1ce   :  { %v1329_v20 = vpop.f32.mrf.mxu0  ;;  %v1522_v14 = vpop.f32.mrf.mxu1 }
 0x1cf   :  { %2120 = vst [vmem:[%s4319_s3 + $0x4c8] sm:$0xff] %v1326_v50  ;;  %2122 = vst [vmem:[%s4319_s3 + $0x4d8] sm:$0xff] %v1519_v30  ;;  %v1330_v56 = vadd.f32 %v1329_v20, %v3235_v3  ;;  %v1523_v51 = vadd.f32 %v1522_v14, %v3238_v31 }
 0x1d0   :  { %v1331_v35 = vpop.f32.mrf.mxu0  ;;  %v1524_v57 = vpop.f32.mrf.mxu1 }
 0x1d1   :  { %2127 = vst [vmem:[%s4319_s3 + $0x500] sm:$0xff] %v1330_v56  ;;  %2129 = vst [vmem:[%s4319_s3 + $0x510] sm:$0xff] %v1523_v51  ;;  %v1332_v10 = vadd.f32 %v1331_v35, %v3241_v38  ;;  %v1525_v7 = vadd.f32 %v1524_v57, %v3244_v22 }
 0x1d2   :  { %v1333_v9 = vpop.f32.mrf.mxu0  ;;  %v1526_v18 = vpop.f32.mrf.mxu1 }
 0x1d3   :  { %2128 = vst [vmem:[%s4319_s3 + $0x508] sm:$0xff] %v1332_v10  ;;  %2130 = vst [vmem:[%s4319_s3 + $0x518] sm:$0xff] %v1525_v7  ;;  %v1334_v1 = vadd.f32 %v1333_v9, %v3235_v3  ;;  %v1527_v43 = vadd.f32 %v1526_v18, %v3238_v31 }
 0x1d4   :  { %v1335_v19 = vpop.f32.mrf.mxu0  ;;  %v1528_v21 = vpop.f32.mrf.mxu1 }
 0x1d5   :  { %2135 = vst [vmem:[%s4319_s3 + $0x540] sm:$0xff] %v1334_v1  ;;  %2137 = vst [vmem:[%s4319_s3 + $0x550] sm:$0xff] %v1527_v43  ;;  %v1336_v37 = vadd.f32 %v1335_v19, %v3241_v38  ;;  %v1529_v34 = vadd.f32 %v1528_v21, %v3244_v22 }
 0x1d6   :  { %v1339_v24 = vpop.f32.mrf.mxu0  ;;  %v1532_v25 = vpop.f32.mrf.mxu1 }
 0x1d7   :  { %2136 = vst [vmem:[%s4319_s3 + $0x548] sm:$0xff] %v1336_v37  ;;  %2138 = vst [vmem:[%s4319_s3 + $0x558] sm:$0xff] %v1529_v34  ;;  %v1340_v4 = vadd.f32 %v1339_v24, %v3235_v3  ;;  %v1533_v29 = vadd.f32 %v1532_v25, %v3238_v31 }
 0x1d8   :  { %v1341_v59 = vpop.f32.mrf.mxu0  ;;  %v1534_v28 = vpop.f32.mrf.mxu1 }
 0x1d9   :  { %2143 = vst [vmem:[%s4319_s3 + $0x580] sm:$0xff] %v1340_v4  ;;  %2145 = vst [vmem:[%s4319_s3 + $0x590] sm:$0xff] %v1533_v29  ;;  %v1342_v60 = vadd.f32 %v1341_v59, %v3241_v38  ;;  %v1535_v39 = vadd.f32 %v1534_v28, %v3244_v22 }
 0x1da   :  { %v1343_v6 = vpop.f32.mrf.mxu0  ;;  %v1536_v36 = vpop.f32.mrf.mxu1 }
 0x1db   :  { %2144 = vst [vmem:[%s4319_s3 + $0x588] sm:$0xff] %v1342_v60  ;;  %2146 = vst [vmem:[%s4319_s3 + $0x598] sm:$0xff] %v1535_v39  ;;  %v1344_v23 = vadd.f32 %v1343_v6, %v3235_v3  ;;  %v1537_v41 = vadd.f32 %v1536_v36, %v3238_v31 }
 0x1dc   :  { %v1345_v0 = vpop.f32.mrf.mxu0  ;;  %v1538_v17 = vpop.f32.mrf.mxu1 }
 0x1dd   :  { %2151 = vst [vmem:[%s4319_s3 + $0x5c0] sm:$0xff] %v1344_v23  ;;  %2153 = vst [vmem:[%s4319_s3 + $0x5d0] sm:$0xff] %v1537_v41  ;;  %v1346_v42 = vadd.f32 %v1345_v0, %v3241_v38  ;;  %v1539_v55 = vadd.f32 %v1538_v17, %v3244_v22  ;;  %v757_v23 = vsub.s32 4, %v3219_v5  ;;  %v765_v41 = vsub.s32 6, %v3219_v5 }
 0x1de   :  { %v1349_v8 = vpop.f32.mrf.mxu0  ;;  %v1542_v12 = vpop.f32.mrf.mxu1 }
 0x1df   :  { %2152 = vst [vmem:[%s4319_s3 + $0x5c8] sm:$0xff] %v1346_v42  ;;  %2154 = vst [vmem:[%s4319_s3 + $0x5d8] sm:$0xff] %v1539_v55  ;;  %v1350_v27 = vadd.f32 %v1349_v8, %v3235_v3  ;;  %v1543_v26 = vadd.f32 %v1542_v12, %v3238_v31  ;;  %v761_v8 = vsub.s32 5, %v3219_v5  ;;  %v769_v12 = vsub.s32 7, %v3219_v5 }
 0x1e0   :  { %v1351_v33 = vpop.f32.mrf.mxu0  ;;  %v1544_v52 = vpop.f32.mrf.mxu1 }
 0x1e1   :  { %2159 = vst [vmem:[%s4319_s3 + $0x600] sm:$0xff] %v1350_v27  ;;  %2161 = vst [vmem:[%s4319_s3 + $0x610] sm:$0xff] %v1543_v26  ;;  %v1352_v53 = vadd.f32 %v1351_v33, %v3241_v38  ;;  %v1545_v49 = vadd.f32 %v1544_v52, %v3244_v22 }
 0x1e2   :  { %v1353_v54 = vpop.f32.mrf.mxu0  ;;  %v1546_v63 = vpop.f32.mrf.mxu1 }
 0x1e3   :  { %2160 = vst [vmem:[%s4319_s3 + $0x608] sm:$0xff] %v1352_v53  ;;  %2162 = vst [vmem:[%s4319_s3 + $0x618] sm:$0xff] %v1545_v49  ;;  %v1354_v13 = vadd.f32 %v1353_v54, %v3235_v3  ;;  %v1547_v61 = vadd.f32 %v1546_v63, %v3238_v31  ;;  %v3779_v53 = vrot.slane %v3230_v45, %v757_v23 }
 0x1e4   :  { %v1355_v58 = vpop.f32.mrf.mxu0  ;;  %v1548_v2 = vpop.f32.mrf.mxu1  ;;  %v3782_v49 = vrot.slane %v3230_v45, %v765_v41  ;;  %v3793_v63 = vrot.slane %v3230_v45, %v761_v8 }
 0x1e5   :  { %2167 = vst [vmem:[%s4319_s3 + $0x640] sm:$0xff] %v1354_v13  ;;  %2169 = vst [vmem:[%s4319_s3 + $0x650] sm:$0xff] %v1547_v61  ;;  %v1356_v40 = vadd.f32 %v1355_v58, %v3241_v38  ;;  %v1549_v11 = vadd.f32 %v1548_v2, %v3244_v22  ;;  %v3796_v13 = vrot.slane %v3230_v45, %v769_v12 }
 0x1e6   :  { %v1359_v48 = vpop.f32.mrf.mxu0  ;;  %v1552_v15 = vpop.f32.mrf.mxu1 }
 0x1e7   :  { %2168 = vst [vmem:[%s4319_s3 + $0x648] sm:$0xff] %v1356_v40  ;;  %2170 = vst [vmem:[%s4319_s3 + $0x658] sm:$0xff] %v1549_v11  ;;  %v1360_v44 = vadd.f32 %v1359_v48, %v3235_v3  ;;  %v1553_v62 = vadd.f32 %v1552_v15, %v3238_v31 }
 0x1e8   :  { %v1361_v46 = vpop.f32.mrf.mxu0  ;;  %v1554_v32 = vpop.f32.mrf.mxu1 }
 0x1e9   :  { %2175 = vst [vmem:[%s4319_s3 + $0x680] sm:$0xff] %v1360_v44  ;;  %2177 = vst [vmem:[%s4319_s3 + $0x690] sm:$0xff] %v1553_v62  ;;  %v1362_v16 = vadd.f32 %v1361_v46, %v3241_v38  ;;  %v1555_v47 = vadd.f32 %v1554_v32, %v3244_v22 }
 0x1ea   :  { %v1363_v50 = vpop.f32.mrf.mxu0  ;;  %v1556_v30 = vpop.f32.mrf.mxu1 }
 0x1eb   :  { %2176 = vst [vmem:[%s4319_s3 + $0x688] sm:$0xff] %v1362_v16  ;;  %2178 = vst [vmem:[%s4319_s3 + $0x698] sm:$0xff] %v1555_v47  ;;  %v1364_v20 = vadd.f32 %v1363_v50, %v3235_v3  ;;  %v1557_v14 = vadd.f32 %v1556_v30, %v3238_v31 }
 0x1ec   :  { %v1365_v56 = vpop.f32.mrf.mxu0  ;;  %v1558_v51 = vpop.f32.mrf.mxu1 }
 0x1ed   :  { %2183 = vst [vmem:[%s4319_s3 + $0x6c0] sm:$0xff] %v1364_v20  ;;  %2185 = vst [vmem:[%s4319_s3 + $0x6d0] sm:$0xff] %v1557_v14  ;;  %v1366_v35 = vadd.f32 %v1365_v56, %v3241_v38  ;;  %v1559_v57 = vadd.f32 %v1558_v51, %v3244_v22 }
 0x1ee   :  { %v1369_v10 = vpop.f32.mrf.mxu0  ;;  %v1562_v7 = vpop.f32.mrf.mxu1 }
 0x1ef   :  { %2184 = vst [vmem:[%s4319_s3 + $0x6c8] sm:$0xff] %v1366_v35  ;;  %2186 = vst [vmem:[%s4319_s3 + $0x6d8] sm:$0xff] %v1559_v57  ;;  %v1370_v9 = vadd.f32 %v1369_v10, %v3235_v3  ;;  %v1563_v18 = vadd.f32 %v1562_v7, %v3238_v31 }
 0x1f0   :  { %v1371_v1 = vpop.f32.mrf.mxu0  ;;  %v1564_v43 = vpop.f32.mrf.mxu1 }
 0x1f1   :  { %2191 = vst [vmem:[%s4319_s3 + $0x700] sm:$0xff] %v1370_v9  ;;  %2193 = vst [vmem:[%s4319_s3 + $0x710] sm:$0xff] %v1563_v18  ;;  %v1372_v19 = vadd.f32 %v1371_v1, %v3241_v38  ;;  %v1565_v21 = vadd.f32 %v1564_v43, %v3244_v22 }
 0x1f2   :  { %v1373_v37 = vpop.f32.mrf.mxu0  ;;  %v1566_v34 = vpop.f32.mrf.mxu1 }
 0x1f3   :  { %2192 = vst [vmem:[%s4319_s3 + $0x708] sm:$0xff] %v1372_v19  ;;  %2194 = vst [vmem:[%s4319_s3 + $0x718] sm:$0xff] %v1565_v21  ;;  %v1374_v24 = vadd.f32 %v1373_v37, %v3235_v3  ;;  %v1567_v25 = vadd.f32 %v1566_v34, %v3238_v31 }
 0x1f4   :  { %v1375_v4 = vpop.f32.mrf.mxu0  ;;  %v1568_v29 = vpop.f32.mrf.mxu1 }
 0x1f5   :  { %2199 = vst [vmem:[%s4319_s3 + $0x740] sm:$0xff] %v1374_v24  ;;  %2201 = vst [vmem:[%s4319_s3 + $0x750] sm:$0xff] %v1567_v25  ;;  %v1376_v59 = vadd.f32 %v1375_v4, %v3241_v38  ;;  %v1569_v28 = vadd.f32 %v1568_v29, %v3244_v22 }
 0x1f6   :  { %v1379_v60 = vpop.f32.mrf.mxu0  ;;  %v1572_v39 = vpop.f32.mrf.mxu1 }
 0x1f7   :  { %2200 = vst [vmem:[%s4319_s3 + $0x748] sm:$0xff] %v1376_v59  ;;  %2202 = vst [vmem:[%s4319_s3 + $0x758] sm:$0xff] %v1569_v28  ;;  %v1380_v6 = vadd.f32 %v1379_v60, %v3235_v3  ;;  %v1573_v36 = vadd.f32 %v1572_v39, %v3238_v31 }
 0x1f8   :  { %v1381_v0 = vpop.f32.mrf.mxu0  ;;  %v1574_v17 = vpop.f32.mrf.mxu1 }
 0x1f9   :  { %2207 = vst [vmem:[%s4319_s3 + $0x780] sm:$0xff] %v1380_v6  ;;  %2209 = vst [vmem:[%s4319_s3 + $0x790] sm:$0xff] %v1573_v36  ;;  %v1382_v42 = vadd.f32 %v1381_v0, %v3241_v38  ;;  %v1575_v55 = vadd.f32 %v1574_v17, %v3244_v22 }
 0x1fa   :  { %v1383_v27 = vpop.f32.mrf.mxu0  ;;  %v1576_v26 = vpop.f32.mrf.mxu1 }
 0x1fb   :  { %2208 = vst [vmem:[%s4319_s3 + $0x788] sm:$0xff] %v1382_v42  ;;  %2210 = vst [vmem:[%s4319_s3 + $0x798] sm:$0xff] %v1575_v55  ;;  %v1384_v33 = vadd.f32 %v1383_v27, %v3235_v3  ;;  %v1577_v52 = vadd.f32 %v1576_v26, %v3238_v31 }
 0x1fc   :  { %v1385_v5 = vpop.f32.mrf.mxu0  ;;  %v1578_v54 = vpop.f32.mrf.mxu1 }
 0x1fd   :  { %2215 = vst [vmem:[%s4319_s3 + $0x7c0] sm:$0xff] %v1384_v33  ;;  %2217 = vst [vmem:[%s4319_s3 + $0x7d0] sm:$0xff] %v1577_v52  ;;  %v1386_v3 = vadd.f32 %v1385_v5, %v3241_v38  ;;  %v1579_v31 = vadd.f32 %v1578_v54, %v3244_v22 }
 0x1fe   :  { %v1615_v61 = vpop.f32.mrf.mxu0  ;;  %v1808_v58 = vpop.f32.mrf.mxu1 }
 0x1ff   :  { %2216 = vst [vmem:[%s4319_s3 + $0x7c8] sm:$0xff] %v1386_v3  ;;  %2218 = vst [vmem:[%s4319_s3 + $0x7d8] sm:$0xff] %v1579_v31  ;;  %v1616_v38 = vadd.f32 %v1615_v61, %v3779_v53  ;;  %v1809_v22 = vadd.f32 %v1808_v58, %v3782_v49 }
 0x200   :  { %v1617_v2 = vpop.f32.mrf.mxu0  ;;  %v1810_v40 = vpop.f32.mrf.mxu1 }
 0x201   :  { %1971 = vst [vmem:[%s4319_s3 + $0x20] sm:$0xff] %v1616_v38  ;;  %1973 = vst [vmem:[%s4319_s3 + $0x30] sm:$0xff] %v1809_v22  ;;  %v1618_v45 = vadd.f32 %v1617_v2, %v3793_v63  ;;  %v1811_v11 = vadd.f32 %v1810_v40, %v3796_v13 }
 0x202   :  { %v1619_v48 = vpop.f32.mrf.mxu0  ;;  %v1812_v15 = vpop.f32.mrf.mxu1 }
 0x203   :  { %1972 = vst [vmem:[%s4319_s3 + $0x28] sm:$0xff] %v1618_v45  ;;  %1974 = vst [vmem:[%s4319_s3 + $0x38] sm:$0xff] %v1811_v11  ;;  %v1620_v44 = vadd.f32 %v1619_v48, %v3779_v53  ;;  %v1813_v62 = vadd.f32 %v1812_v15, %v3782_v49 }
 0x204   :  { %v1621_v46 = vpop.f32.mrf.mxu0  ;;  %v1814_v32 = vpop.f32.mrf.mxu1 }
 0x205   :  { %1979 = vst [vmem:[%s4319_s3 + $0x60] sm:$0xff] %v1620_v44  ;;  %1981 = vst [vmem:[%s4319_s3 + $0x70] sm:$0xff] %v1813_v62  ;;  %v1622_v16 = vadd.f32 %v1621_v46, %v3793_v63  ;;  %v1815_v47 = vadd.f32 %v1814_v32, %v3796_v13 }
 0x206   :  { %v1625_v50 = vpop.f32.mrf.mxu0  ;;  %v1818_v30 = vpop.f32.mrf.mxu1 }
 0x207   :  { %1980 = vst [vmem:[%s4319_s3 + $0x68] sm:$0xff] %v1622_v16  ;;  %1982 = vst [vmem:[%s4319_s3 + $0x78] sm:$0xff] %v1815_v47  ;;  %v1626_v20 = vadd.f32 %v1625_v50, %v3779_v53  ;;  %v1819_v14 = vadd.f32 %v1818_v30, %v3782_v49 }
 0x208   :  { %v1627_v56 = vpop.f32.mrf.mxu0  ;;  %v1820_v51 = vpop.f32.mrf.mxu1 }
 0x209   :  { %1987 = vst [vmem:[%s4319_s3 + $0xa0] sm:$0xff] %v1626_v20  ;;  %1989 = vst [vmem:[%s4319_s3 + $0xb0] sm:$0xff] %v1819_v14  ;;  %v1628_v35 = vadd.f32 %v1627_v56, %v3793_v63  ;;  %v1821_v57 = vadd.f32 %v1820_v51, %v3796_v13 }
 0x20a   :  { %v1629_v10 = vpop.f32.mrf.mxu0  ;;  %v1822_v7 = vpop.f32.mrf.mxu1 }
 0x20b   :  { %1988 = vst [vmem:[%s4319_s3 + $0xa8] sm:$0xff] %v1628_v35  ;;  %1990 = vst [vmem:[%s4319_s3 + $0xb8] sm:$0xff] %v1821_v57  ;;  %v1630_v9 = vadd.f32 %v1629_v10, %v3779_v53  ;;  %v1823_v18 = vadd.f32 %v1822_v7, %v3782_v49 }
 0x20c   :  { %v1631_v1 = vpop.f32.mrf.mxu0  ;;  %v1824_v43 = vpop.f32.mrf.mxu1 }
 0x20d   :  { %1995 = vst [vmem:[%s4319_s3 + $0xe0] sm:$0xff] %v1630_v9  ;;  %1997 = vst [vmem:[%s4319_s3 + $0xf0] sm:$0xff] %v1823_v18  ;;  %v1632_v19 = vadd.f32 %v1631_v1, %v3793_v63  ;;  %v1825_v21 = vadd.f32 %v1824_v43, %v3796_v13 }
 0x20e   :  { %v1635_v37 = vpop.f32.mrf.mxu0  ;;  %v1828_v34 = vpop.f32.mrf.mxu1 }
 0x20f   :  { %1996 = vst [vmem:[%s4319_s3 + $0xe8] sm:$0xff] %v1632_v19  ;;  %1998 = vst [vmem:[%s4319_s3 + $0xf8] sm:$0xff] %v1825_v21  ;;  %v1636_v24 = vadd.f32 %v1635_v37, %v3779_v53  ;;  %v1829_v25 = vadd.f32 %v1828_v34, %v3782_v49 }
 0x210   :  { %v1637_v4 = vpop.f32.mrf.mxu0  ;;  %v1830_v29 = vpop.f32.mrf.mxu1 }
 0x211   :  { %2003 = vst [vmem:[%s4319_s3 + $0x120] sm:$0xff] %v1636_v24  ;;  %2005 = vst [vmem:[%s4319_s3 + $0x130] sm:$0xff] %v1829_v25  ;;  %v1638_v59 = vadd.f32 %v1637_v4, %v3793_v63  ;;  %v1831_v28 = vadd.f32 %v1830_v29, %v3796_v13 }
 0x212   :  { %v1639_v60 = vpop.f32.mrf.mxu0  ;;  %v1832_v39 = vpop.f32.mrf.mxu1 }
 0x213   :  { %2004 = vst [vmem:[%s4319_s3 + $0x128] sm:$0xff] %v1638_v59  ;;  %2006 = vst [vmem:[%s4319_s3 + $0x138] sm:$0xff] %v1831_v28  ;;  %v1640_v6 = vadd.f32 %v1639_v60, %v3779_v53  ;;  %v1833_v36 = vadd.f32 %v1832_v39, %v3782_v49 }
 0x214   :  { %v1641_v23 = vpop.f32.mrf.mxu0  ;;  %v1834_v41 = vpop.f32.mrf.mxu1 }
 0x215   :  { %2011 = vst [vmem:[%s4319_s3 + $0x160] sm:$0xff] %v1640_v6  ;;  %2013 = vst [vmem:[%s4319_s3 + $0x170] sm:$0xff] %v1833_v36  ;;  %v1642_v0 = vadd.f32 %v1641_v23, %v3793_v63  ;;  %v1835_v17 = vadd.f32 %v1834_v41, %v3796_v13 }
 0x216   :  { %v1645_v42 = vpop.f32.mrf.mxu0  ;;  %v1838_v55 = vpop.f32.mrf.mxu1 }
 0x217   :  { %2012 = vst [vmem:[%s4319_s3 + $0x168] sm:$0xff] %v1642_v0  ;;  %2014 = vst [vmem:[%s4319_s3 + $0x178] sm:$0xff] %v1835_v17  ;;  %v1646_v8 = vadd.f32 %v1645_v42, %v3779_v53  ;;  %v1839_v12 = vadd.f32 %v1838_v55, %v3782_v49 }
 0x218   :  { %v1647_v27 = vpop.f32.mrf.mxu0  ;;  %v1840_v26 = vpop.f32.mrf.mxu1 }
 0x219   :  { %2019 = vst [vmem:[%s4319_s3 + $0x1a0] sm:$0xff] %v1646_v8  ;;  %2021 = vst [vmem:[%s4319_s3 + $0x1b0] sm:$0xff] %v1839_v12  ;;  %v1648_v33 = vadd.f32 %v1647_v27, %v3793_v63  ;;  %v1841_v52 = vadd.f32 %v1840_v26, %v3796_v13 }
 0x21a   :  { %v1649_v5 = vpop.f32.mrf.mxu0  ;;  %v1842_v54 = vpop.f32.mrf.mxu1 }
 0x21b   :  { %2020 = vst [vmem:[%s4319_s3 + $0x1a8] sm:$0xff] %v1648_v33  ;;  %2022 = vst [vmem:[%s4319_s3 + $0x1b8] sm:$0xff] %v1841_v52  ;;  %v1650_v3 = vadd.f32 %v1649_v5, %v3779_v53  ;;  %v1843_v31 = vadd.f32 %v1842_v54, %v3782_v49 }
 0x21c   :  { %v1651_v61 = vpop.f32.mrf.mxu0  ;;  %v1844_v58 = vpop.f32.mrf.mxu1 }
 0x21d   :  { %2027 = vst [vmem:[%s4319_s3 + $0x1e0] sm:$0xff] %v1650_v3  ;;  %2029 = vst [vmem:[%s4319_s3 + $0x1f0] sm:$0xff] %v1843_v31  ;;  %v1652_v38 = vadd.f32 %v1651_v61, %v3793_v63  ;;  %v1845_v22 = vadd.f32 %v1844_v58, %v3796_v13 }
 0x21e   :  { %v1655_v2 = vpop.f32.mrf.mxu0  ;;  %v1848_v40 = vpop.f32.mrf.mxu1 }
 0x21f   :  { %2028 = vst [vmem:[%s4319_s3 + $0x1e8] sm:$0xff] %v1652_v38  ;;  %2030 = vst [vmem:[%s4319_s3 + $0x1f8] sm:$0xff] %v1845_v22  ;;  %v1656_v45 = vadd.f32 %v1655_v2, %v3779_v53  ;;  %v1849_v11 = vadd.f32 %v1848_v40, %v3782_v49 }
 0x220   :  { %v1657_v48 = vpop.f32.mrf.mxu0  ;;  %v1850_v15 = vpop.f32.mrf.mxu1 }
 0x221   :  { %2035 = vst [vmem:[%s4319_s3 + $0x220] sm:$0xff] %v1656_v45  ;;  %2037 = vst [vmem:[%s4319_s3 + $0x230] sm:$0xff] %v1849_v11  ;;  %v1658_v44 = vadd.f32 %v1657_v48, %v3793_v63  ;;  %v1851_v62 = vadd.f32 %v1850_v15, %v3796_v13 }
 0x222   :  { %v1659_v46 = vpop.f32.mrf.mxu0  ;;  %v1852_v32 = vpop.f32.mrf.mxu1 }
 0x223   :  { %2036 = vst [vmem:[%s4319_s3 + $0x228] sm:$0xff] %v1658_v44  ;;  %2038 = vst [vmem:[%s4319_s3 + $0x238] sm:$0xff] %v1851_v62  ;;  %v1660_v16 = vadd.f32 %v1659_v46, %v3779_v53  ;;  %v1853_v47 = vadd.f32 %v1852_v32, %v3782_v49 }
 0x224   :  { %v1661_v50 = vpop.f32.mrf.mxu0  ;;  %v1854_v30 = vpop.f32.mrf.mxu1 }
 0x225   :  { %2043 = vst [vmem:[%s4319_s3 + $0x260] sm:$0xff] %v1660_v16  ;;  %2045 = vst [vmem:[%s4319_s3 + $0x270] sm:$0xff] %v1853_v47  ;;  %v1662_v20 = vadd.f32 %v1661_v50, %v3793_v63  ;;  %v1855_v14 = vadd.f32 %v1854_v30, %v3796_v13 }
 0x226   :  { %v1665_v56 = vpop.f32.mrf.mxu0  ;;  %v1858_v51 = vpop.f32.mrf.mxu1 }
 0x227   :  { %2044 = vst [vmem:[%s4319_s3 + $0x268] sm:$0xff] %v1662_v20  ;;  %2046 = vst [vmem:[%s4319_s3 + $0x278] sm:$0xff] %v1855_v14  ;;  %v1666_v35 = vadd.f32 %v1665_v56, %v3779_v53  ;;  %v1859_v57 = vadd.f32 %v1858_v51, %v3782_v49 }
 0x228   :  { %v1667_v10 = vpop.f32.mrf.mxu0  ;;  %v1860_v7 = vpop.f32.mrf.mxu1 }
 0x229   :  { %2051 = vst [vmem:[%s4319_s3 + $0x2a0] sm:$0xff] %v1666_v35  ;;  %2053 = vst [vmem:[%s4319_s3 + $0x2b0] sm:$0xff] %v1859_v57  ;;  %v1668_v9 = vadd.f32 %v1667_v10, %v3793_v63  ;;  %v1861_v18 = vadd.f32 %v1860_v7, %v3796_v13 }
 0x22a   :  { %v1669_v1 = vpop.f32.mrf.mxu0  ;;  %v1862_v43 = vpop.f32.mrf.mxu1 }
 0x22b   :  { %2052 = vst [vmem:[%s4319_s3 + $0x2a8] sm:$0xff] %v1668_v9  ;;  %2054 = vst [vmem:[%s4319_s3 + $0x2b8] sm:$0xff] %v1861_v18  ;;  %v1670_v19 = vadd.f32 %v1669_v1, %v3779_v53  ;;  %v1863_v21 = vadd.f32 %v1862_v43, %v3782_v49 }
 0x22c   :  { %v1671_v37 = vpop.f32.mrf.mxu0  ;;  %v1864_v34 = vpop.f32.mrf.mxu1 }
 0x22d   :  { %2059 = vst [vmem:[%s4319_s3 + $0x2e0] sm:$0xff] %v1670_v19  ;;  %2061 = vst [vmem:[%s4319_s3 + $0x2f0] sm:$0xff] %v1863_v21  ;;  %v1672_v24 = vadd.f32 %v1671_v37, %v3793_v63  ;;  %v1865_v25 = vadd.f32 %v1864_v34, %v3796_v13 }
 0x22e   :  { %v1675_v4 = vpop.f32.mrf.mxu0  ;;  %v1868_v29 = vpop.f32.mrf.mxu1 }
 0x22f   :  { %2060 = vst [vmem:[%s4319_s3 + $0x2e8] sm:$0xff] %v1672_v24  ;;  %2062 = vst [vmem:[%s4319_s3 + $0x2f8] sm:$0xff] %v1865_v25  ;;  %v1676_v59 = vadd.f32 %v1675_v4, %v3779_v53  ;;  %v1869_v28 = vadd.f32 %v1868_v29, %v3782_v49 }
 0x230   :  { %v1677_v60 = vpop.f32.mrf.mxu0  ;;  %v1870_v39 = vpop.f32.mrf.mxu1 }
 0x231   :  { %2067 = vst [vmem:[%s4319_s3 + $0x320] sm:$0xff] %v1676_v59  ;;  %2069 = vst [vmem:[%s4319_s3 + $0x330] sm:$0xff] %v1869_v28  ;;  %v1678_v6 = vadd.f32 %v1677_v60, %v3793_v63  ;;  %v1871_v36 = vadd.f32 %v1870_v39, %v3796_v13 }
 0x232   :  { %v1679_v23 = vpop.f32.mrf.mxu0  ;;  %v1872_v41 = vpop.f32.mrf.mxu1 }
 0x233   :  { %2068 = vst [vmem:[%s4319_s3 + $0x328] sm:$0xff] %v1678_v6  ;;  %2070 = vst [vmem:[%s4319_s3 + $0x338] sm:$0xff] %v1871_v36  ;;  %v1680_v0 = vadd.f32 %v1679_v23, %v3779_v53  ;;  %v1873_v17 = vadd.f32 %v1872_v41, %v3782_v49 }
 0x234   :  { %v1681_v42 = vpop.f32.mrf.mxu0  ;;  %v1874_v55 = vpop.f32.mrf.mxu1 }
 0x235   :  { %2075 = vst [vmem:[%s4319_s3 + $0x360] sm:$0xff] %v1680_v0  ;;  %2077 = vst [vmem:[%s4319_s3 + $0x370] sm:$0xff] %v1873_v17  ;;  %v1682_v8 = vadd.f32 %v1681_v42, %v3793_v63  ;;  %v1875_v12 = vadd.f32 %v1874_v55, %v3796_v13 }
 0x236   :  { %v1685_v27 = vpop.f32.mrf.mxu0  ;;  %v1878_v26 = vpop.f32.mrf.mxu1 }
 0x237   :  { %2076 = vst [vmem:[%s4319_s3 + $0x368] sm:$0xff] %v1682_v8  ;;  %2078 = vst [vmem:[%s4319_s3 + $0x378] sm:$0xff] %v1875_v12  ;;  %v1686_v33 = vadd.f32 %v1685_v27, %v3779_v53  ;;  %v1879_v52 = vadd.f32 %v1878_v26, %v3782_v49 }
 0x238   :  { %v1687_v5 = vpop.f32.mrf.mxu0  ;;  %v1880_v54 = vpop.f32.mrf.mxu1 }
 0x239   :  { %2083 = vst [vmem:[%s4319_s3 + $0x3a0] sm:$0xff] %v1686_v33  ;;  %2085 = vst [vmem:[%s4319_s3 + $0x3b0] sm:$0xff] %v1879_v52  ;;  %v1688_v3 = vadd.f32 %v1687_v5, %v3793_v63  ;;  %v1881_v31 = vadd.f32 %v1880_v54, %v3796_v13 }
 0x23a   :  { %v1689_v61 = vpop.f32.mrf.mxu0  ;;  %v1882_v58 = vpop.f32.mrf.mxu1 }
 0x23b   :  { %2084 = vst [vmem:[%s4319_s3 + $0x3a8] sm:$0xff] %v1688_v3  ;;  %2086 = vst [vmem:[%s4319_s3 + $0x3b8] sm:$0xff] %v1881_v31  ;;  %v1690_v38 = vadd.f32 %v1689_v61, %v3779_v53  ;;  %v1883_v22 = vadd.f32 %v1882_v58, %v3782_v49 }
 0x23c   :  { %v1691_v2 = vpop.f32.mrf.mxu0  ;;  %v1884_v40 = vpop.f32.mrf.mxu1 }
 0x23d   :  { %2091 = vst [vmem:[%s4319_s3 + $0x3e0] sm:$0xff] %v1690_v38  ;;  %2093 = vst [vmem:[%s4319_s3 + $0x3f0] sm:$0xff] %v1883_v22  ;;  %v1692_v45 = vadd.f32 %v1691_v2, %v3793_v63  ;;  %v1885_v11 = vadd.f32 %v1884_v40, %v3796_v13 }
 0x23e   :  { %v1695_v48 = vpop.f32.mrf.mxu0  ;;  %v1888_v15 = vpop.f32.mrf.mxu1 }
 0x23f   :  { %2092 = vst [vmem:[%s4319_s3 + $0x3e8] sm:$0xff] %v1692_v45  ;;  %2094 = vst [vmem:[%s4319_s3 + $0x3f8] sm:$0xff] %v1885_v11  ;;  %v1696_v44 = vadd.f32 %v1695_v48, %v3779_v53  ;;  %v1889_v62 = vadd.f32 %v1888_v15, %v3782_v49 }
 0x240   :  { %v1697_v46 = vpop.f32.mrf.mxu0  ;;  %v1890_v32 = vpop.f32.mrf.mxu1 }
 0x241   :  { %2099 = vst [vmem:[%s4319_s3 + $0x420] sm:$0xff] %v1696_v44  ;;  %2101 = vst [vmem:[%s4319_s3 + $0x430] sm:$0xff] %v1889_v62  ;;  %v1698_v16 = vadd.f32 %v1697_v46, %v3793_v63  ;;  %v1891_v47 = vadd.f32 %v1890_v32, %v3796_v13 }
 0x242   :  { %v1699_v50 = vpop.f32.mrf.mxu0  ;;  %v1892_v30 = vpop.f32.mrf.mxu1 }
 0x243   :  { %2100 = vst [vmem:[%s4319_s3 + $0x428] sm:$0xff] %v1698_v16  ;;  %2102 = vst [vmem:[%s4319_s3 + $0x438] sm:$0xff] %v1891_v47  ;;  %v1700_v20 = vadd.f32 %v1699_v50, %v3779_v53  ;;  %v1893_v14 = vadd.f32 %v1892_v30, %v3782_v49 }
 0x244   :  { %v1701_v56 = vpop.f32.mrf.mxu0  ;;  %v1894_v51 = vpop.f32.mrf.mxu1 }
 0x245   :  { %2107 = vst [vmem:[%s4319_s3 + $0x460] sm:$0xff] %v1700_v20  ;;  %2109 = vst [vmem:[%s4319_s3 + $0x470] sm:$0xff] %v1893_v14  ;;  %v1702_v35 = vadd.f32 %v1701_v56, %v3793_v63  ;;  %v1895_v57 = vadd.f32 %v1894_v51, %v3796_v13 }
 0x246   :  { %v1705_v10 = vpop.f32.mrf.mxu0  ;;  %v1898_v7 = vpop.f32.mrf.mxu1 }
 0x247   :  { %2108 = vst [vmem:[%s4319_s3 + $0x468] sm:$0xff] %v1702_v35  ;;  %2110 = vst [vmem:[%s4319_s3 + $0x478] sm:$0xff] %v1895_v57  ;;  %v1706_v9 = vadd.f32 %v1705_v10, %v3779_v53  ;;  %v1899_v18 = vadd.f32 %v1898_v7, %v3782_v49 }
 0x248   :  { %v1707_v1 = vpop.f32.mrf.mxu0  ;;  %v1900_v43 = vpop.f32.mrf.mxu1 }
 0x249   :  { %2115 = vst [vmem:[%s4319_s3 + $0x4a0] sm:$0xff] %v1706_v9  ;;  %2117 = vst [vmem:[%s4319_s3 + $0x4b0] sm:$0xff] %v1899_v18  ;;  %v1708_v19 = vadd.f32 %v1707_v1, %v3793_v63  ;;  %v1901_v21 = vadd.f32 %v1900_v43, %v3796_v13 }
 0x24a   :  { %v1709_v37 = vpop.f32.mrf.mxu0  ;;  %v1902_v34 = vpop.f32.mrf.mxu1 }
 0x24b   :  { %2116 = vst [vmem:[%s4319_s3 + $0x4a8] sm:$0xff] %v1708_v19  ;;  %2118 = vst [vmem:[%s4319_s3 + $0x4b8] sm:$0xff] %v1901_v21  ;;  %v1710_v24 = vadd.f32 %v1709_v37, %v3779_v53  ;;  %v1903_v25 = vadd.f32 %v1902_v34, %v3782_v49 }
 0x24c   :  { %v1711_v4 = vpop.f32.mrf.mxu0  ;;  %v1904_v29 = vpop.f32.mrf.mxu1 }
 0x24d   :  { %2123 = vst [vmem:[%s4319_s3 + $0x4e0] sm:$0xff] %v1710_v24  ;;  %2125 = vst [vmem:[%s4319_s3 + $0x4f0] sm:$0xff] %v1903_v25  ;;  %v1712_v59 = vadd.f32 %v1711_v4, %v3793_v63  ;;  %v1905_v28 = vadd.f32 %v1904_v29, %v3796_v13 }
 0x24e   :  { %v1715_v60 = vpop.f32.mrf.mxu0  ;;  %v1908_v39 = vpop.f32.mrf.mxu1 }
 0x24f   :  { %2124 = vst [vmem:[%s4319_s3 + $0x4e8] sm:$0xff] %v1712_v59  ;;  %2126 = vst [vmem:[%s4319_s3 + $0x4f8] sm:$0xff] %v1905_v28  ;;  %v1716_v6 = vadd.f32 %v1715_v60, %v3779_v53  ;;  %v1909_v36 = vadd.f32 %v1908_v39, %v3782_v49 }
 0x250   :  { %v1717_v23 = vpop.f32.mrf.mxu0  ;;  %v1910_v41 = vpop.f32.mrf.mxu1 }
 0x251   :  { %2131 = vst [vmem:[%s4319_s3 + $0x520] sm:$0xff] %v1716_v6  ;;  %2133 = vst [vmem:[%s4319_s3 + $0x530] sm:$0xff] %v1909_v36  ;;  %v1718_v0 = vadd.f32 %v1717_v23, %v3793_v63  ;;  %v1911_v17 = vadd.f32 %v1910_v41, %v3796_v13 }
 0x252   :  { %v1719_v42 = vpop.f32.mrf.mxu0  ;;  %v1912_v55 = vpop.f32.mrf.mxu1 }
 0x253   :  { %2132 = vst [vmem:[%s4319_s3 + $0x528] sm:$0xff] %v1718_v0  ;;  %2134 = vst [vmem:[%s4319_s3 + $0x538] sm:$0xff] %v1911_v17  ;;  %v1720_v8 = vadd.f32 %v1719_v42, %v3779_v53  ;;  %v1913_v12 = vadd.f32 %v1912_v55, %v3782_v49 }
 0x254   :  { %v1721_v27 = vpop.f32.mrf.mxu0  ;;  %v1914_v26 = vpop.f32.mrf.mxu1 }
 0x255   :  { %2139 = vst [vmem:[%s4319_s3 + $0x560] sm:$0xff] %v1720_v8  ;;  %2141 = vst [vmem:[%s4319_s3 + $0x570] sm:$0xff] %v1913_v12  ;;  %v1722_v33 = vadd.f32 %v1721_v27, %v3793_v63  ;;  %v1915_v52 = vadd.f32 %v1914_v26, %v3796_v13 }
 0x256   :  { %v1725_v5 = vpop.f32.mrf.mxu0  ;;  %v1918_v54 = vpop.f32.mrf.mxu1 }
 0x257   :  { %2140 = vst [vmem:[%s4319_s3 + $0x568] sm:$0xff] %v1722_v33  ;;  %2142 = vst [vmem:[%s4319_s3 + $0x578] sm:$0xff] %v1915_v52  ;;  %v1726_v3 = vadd.f32 %v1725_v5, %v3779_v53  ;;  %v1919_v31 = vadd.f32 %v1918_v54, %v3782_v49 }
 0x258   :  { %v1727_v61 = vpop.f32.mrf.mxu0  ;;  %v1920_v58 = vpop.f32.mrf.mxu1 }
 0x259   :  { %2147 = vst [vmem:[%s4319_s3 + $0x5a0] sm:$0xff] %v1726_v3  ;;  %2149 = vst [vmem:[%s4319_s3 + $0x5b0] sm:$0xff] %v1919_v31  ;;  %v1728_v38 = vadd.f32 %v1727_v61, %v3793_v63  ;;  %v1921_v22 = vadd.f32 %v1920_v58, %v3796_v13 }
 0x25a   :  { %v1729_v2 = vpop.f32.mrf.mxu0  ;;  %v1922_v40 = vpop.f32.mrf.mxu1 }
 0x25b   :  { %2148 = vst [vmem:[%s4319_s3 + $0x5a8] sm:$0xff] %v1728_v38  ;;  %2150 = vst [vmem:[%s4319_s3 + $0x5b8] sm:$0xff] %v1921_v22  ;;  %v1730_v45 = vadd.f32 %v1729_v2, %v3779_v53  ;;  %v1923_v11 = vadd.f32 %v1922_v40, %v3782_v49 }
 0x25c   :  { %v1731_v48 = vpop.f32.mrf.mxu0  ;;  %v1924_v15 = vpop.f32.mrf.mxu1 }
 0x25d   :  { %2155 = vst [vmem:[%s4319_s3 + $0x5e0] sm:$0xff] %v1730_v45  ;;  %2157 = vst [vmem:[%s4319_s3 + $0x5f0] sm:$0xff] %v1923_v11  ;;  %v1732_v44 = vadd.f32 %v1731_v48, %v3793_v63  ;;  %v1925_v62 = vadd.f32 %v1924_v15, %v3796_v13 }
 0x25e   :  { %v1735_v46 = vpop.f32.mrf.mxu0  ;;  %v1928_v32 = vpop.f32.mrf.mxu1 }
 0x25f   :  { %2156 = vst [vmem:[%s4319_s3 + $0x5e8] sm:$0xff] %v1732_v44  ;;  %2158 = vst [vmem:[%s4319_s3 + $0x5f8] sm:$0xff] %v1925_v62  ;;  %v1736_v16 = vadd.f32 %v1735_v46, %v3779_v53  ;;  %v1929_v47 = vadd.f32 %v1928_v32, %v3782_v49 }
 0x260   :  { %v1737_v50 = vpop.f32.mrf.mxu0  ;;  %v1930_v30 = vpop.f32.mrf.mxu1 }
 0x261   :  { %2163 = vst [vmem:[%s4319_s3 + $0x620] sm:$0xff] %v1736_v16  ;;  %2165 = vst [vmem:[%s4319_s3 + $0x630] sm:$0xff] %v1929_v47  ;;  %v1738_v20 = vadd.f32 %v1737_v50, %v3793_v63  ;;  %v1931_v14 = vadd.f32 %v1930_v30, %v3796_v13 }
 0x262   :  { %v1739_v56 = vpop.f32.mrf.mxu0  ;;  %v1932_v51 = vpop.f32.mrf.mxu1 }
 0x263   :  { %2164 = vst [vmem:[%s4319_s3 + $0x628] sm:$0xff] %v1738_v20  ;;  %2166 = vst [vmem:[%s4319_s3 + $0x638] sm:$0xff] %v1931_v14  ;;  %v1740_v35 = vadd.f32 %v1739_v56, %v3779_v53  ;;  %v1933_v57 = vadd.f32 %v1932_v51, %v3782_v49 }
 0x264   :  { %v1741_v10 = vpop.f32.mrf.mxu0  ;;  %v1934_v7 = vpop.f32.mrf.mxu1 }
 0x265   :  { %2171 = vst [vmem:[%s4319_s3 + $0x660] sm:$0xff] %v1740_v35  ;;  %2173 = vst [vmem:[%s4319_s3 + $0x670] sm:$0xff] %v1933_v57  ;;  %v1742_v9 = vadd.f32 %v1741_v10, %v3793_v63  ;;  %v1935_v18 = vadd.f32 %v1934_v7, %v3796_v13 }
 0x266   :  { %v1745_v1 = vpop.f32.mrf.mxu0  ;;  %v1938_v43 = vpop.f32.mrf.mxu1 }
 0x267   :  { %2172 = vst [vmem:[%s4319_s3 + $0x668] sm:$0xff] %v1742_v9  ;;  %2174 = vst [vmem:[%s4319_s3 + $0x678] sm:$0xff] %v1935_v18  ;;  %v1746_v19 = vadd.f32 %v1745_v1, %v3779_v53  ;;  %v1939_v21 = vadd.f32 %v1938_v43, %v3782_v49 }
 0x268   :  { %v1747_v37 = vpop.f32.mrf.mxu0  ;;  %v1940_v34 = vpop.f32.mrf.mxu1 }
 0x269   :  { %2179 = vst [vmem:[%s4319_s3 + $0x6a0] sm:$0xff] %v1746_v19  ;;  %2181 = vst [vmem:[%s4319_s3 + $0x6b0] sm:$0xff] %v1939_v21  ;;  %v1748_v24 = vadd.f32 %v1747_v37, %v3793_v63  ;;  %v1941_v25 = vadd.f32 %v1940_v34, %v3796_v13 }
 0x26a   :  { %v1749_v4 = vpop.f32.mrf.mxu0  ;;  %v1942_v29 = vpop.f32.mrf.mxu1 }
 0x26b   :  { %2180 = vst [vmem:[%s4319_s3 + $0x6a8] sm:$0xff] %v1748_v24  ;;  %2182 = vst [vmem:[%s4319_s3 + $0x6b8] sm:$0xff] %v1941_v25  ;;  %v1750_v59 = vadd.f32 %v1749_v4, %v3779_v53  ;;  %v1943_v28 = vadd.f32 %v1942_v29, %v3782_v49 }
 0x26c   :  { %v1751_v60 = vpop.f32.mrf.mxu0  ;;  %v1944_v39 = vpop.f32.mrf.mxu1 }
 0x26d   :  { %2187 = vst [vmem:[%s4319_s3 + $0x6e0] sm:$0xff] %v1750_v59  ;;  %2189 = vst [vmem:[%s4319_s3 + $0x6f0] sm:$0xff] %v1943_v28  ;;  %v1752_v6 = vadd.f32 %v1751_v60, %v3793_v63  ;;  %v1945_v36 = vadd.f32 %v1944_v39, %v3796_v13 }
 0x26e   :  { %v1755_v23 = vpop.f32.mrf.mxu0  ;;  %v1948_v41 = vpop.f32.mrf.mxu1 }
 0x26f   :  { %2188 = vst [vmem:[%s4319_s3 + $0x6e8] sm:$0xff] %v1752_v6  ;;  %2190 = vst [vmem:[%s4319_s3 + $0x6f8] sm:$0xff] %v1945_v36  ;;  %v1756_v0 = vadd.f32 %v1755_v23, %v3779_v53  ;;  %v1949_v17 = vadd.f32 %v1948_v41, %v3782_v49 }
 0x270   :  { %v1757_v42 = vpop.f32.mrf.mxu0  ;;  %v1950_v55 = vpop.f32.mrf.mxu1 }
 0x271   :  { %2195 = vst [vmem:[%s4319_s3 + $0x720] sm:$0xff] %v1756_v0  ;;  %2197 = vst [vmem:[%s4319_s3 + $0x730] sm:$0xff] %v1949_v17  ;;  %v1758_v8 = vadd.f32 %v1757_v42, %v3793_v63  ;;  %v1951_v12 = vadd.f32 %v1950_v55, %v3796_v13 }
 0x272   :  { %v1759_v27 = vpop.f32.mrf.mxu0  ;;  %v1952_v26 = vpop.f32.mrf.mxu1 }
 0x273   :  { %2196 = vst [vmem:[%s4319_s3 + $0x728] sm:$0xff] %v1758_v8  ;;  %2198 = vst [vmem:[%s4319_s3 + $0x738] sm:$0xff] %v1951_v12  ;;  %v1760_v33 = vadd.f32 %v1759_v27, %v3779_v53  ;;  %v1953_v52 = vadd.f32 %v1952_v26, %v3782_v49 }
 0x274   :  { %v1761_v5 = vpop.f32.mrf.mxu0  ;;  %v1954_v54 = vpop.f32.mrf.mxu1 }
 0x275   :  { %2203 = vst [vmem:[%s4319_s3 + $0x760] sm:$0xff] %v1760_v33  ;;  %2205 = vst [vmem:[%s4319_s3 + $0x770] sm:$0xff] %v1953_v52  ;;  %v1762_v3 = vadd.f32 %v1761_v5, %v3793_v63  ;;  %v1955_v31 = vadd.f32 %v1954_v54, %v3796_v13 }
 0x276   :  { %v1765_v61 = vpop.f32.mrf.mxu0  ;;  %v1958_v58 = vpop.f32.mrf.mxu1 }
 0x277   :  { %2204 = vst [vmem:[%s4319_s3 + $0x768] sm:$0xff] %v1762_v3  ;;  %2206 = vst [vmem:[%s4319_s3 + $0x778] sm:$0xff] %v1955_v31  ;;  %v1766_v38 = vadd.f32 %v1765_v61, %v3779_v53  ;;  %v1959_v22 = vadd.f32 %v1958_v58, %v3782_v49 }
 0x278   :  { %v1767_v2 = vpop.f32.mrf.mxu0  ;;  %v1960_v40 = vpop.f32.mrf.mxu1 }
 0x279   :  { %2211 = vst [vmem:[%s4319_s3 + $0x7a0] sm:$0xff] %v1766_v38  ;;  %2213 = vst [vmem:[%s4319_s3 + $0x7b0] sm:$0xff] %v1959_v22  ;;  %v1768_v45 = vadd.f32 %v1767_v2, %v3793_v63  ;;  %v1961_v11 = vadd.f32 %v1960_v40, %v3796_v13 }
 0x27a   :  { %v1769_v48 = vpop.f32.mrf.mxu0  ;;  %v1962_v15 = vpop.f32.mrf.mxu1 }
 0x27b   :  { %2212 = vst [vmem:[%s4319_s3 + $0x7a8] sm:$0xff] %v1768_v45  ;;  %2214 = vst [vmem:[%s4319_s3 + $0x7b8] sm:$0xff] %v1961_v11  ;;  %v1770_v44 = vadd.f32 %v1769_v48, %v3779_v53  ;;  %v1963_v62 = vadd.f32 %v1962_v15, %v3782_v49 }
 0x27c   :  { %v1771_v46 = vpop.f32.mrf.mxu0  ;;  %v1964_v32 = vpop.f32.mrf.mxu1 }
 0x27d   :  { %2219 = vst [vmem:[%s4319_s3 + $0x7e0] sm:$0xff] %v1770_v44  ;;  %2221 = vst [vmem:[%s4319_s3 + $0x7f0] sm:$0xff] %v1963_v62  ;;  %v1772_v16 = vadd.f32 %v1771_v46, %v3793_v63  ;;  %v1965_v47 = vadd.f32 %v1964_v32, %v3796_v13 }
 0x27f   :  { %2220 = vst [vmem:[%s4319_s3 + $0x7e8] sm:$0xff] %v1772_v16  ;;  %2222 = vst [vmem:[%s4319_s3 + $0x7f8] sm:$0xff] %v1965_v47 }
 0x280   :  { %2227 = vsyncpa [#allocation4], 1 }

</bundles_post_ra>
